<compile_context>
chip_gen: v5e
topology: v5e:2x2
jax: 0.10.0
libtpu: 0.0.40
codegen_flags: <defaults>
</compile_context>

<pallas_src>
import math

import jax
import jax.numpy as jnp
import numpy as np
from jax import lax
from jax.experimental import pallas as pl
from jax.experimental.pallas import tpu as pltpu

VOCAB = 20
EMB_DIM = 16
HIDDEN_DIM = 32
NUM_LAYERS = 2
BATCH = 2
SEQ = 8


def _lstm_net_kernel(x_ref, lens_ref, wih0_ref, whh0_ref, b0_ref,
                     wihr_ref, whhr_ref, br_ref, wcls_ref, bcls_ref,
                     out_ref, proj_ref):
    """Fused NUM_LAYERS-layer LSTM + online length-gather + Linear + Sigmoid.

    x_ref    : (T*B, E)  time-major embedded inputs (row t*B+b = step t, seq b)
    lens_ref : (B, 1)    int32 context lengths
    wih0_ref : (E, 4H)   layer-0 input weights (transposed, gate order i|f|g|o)
    whh0_ref : (H, 4H)   layer-0 recurrent weights (transposed)
    b0_ref   : (1, 4H)   layer-0 bias (b_ih + b_hh)
    wihr/whhr: (L-1, H, 4H), br: (L-1, 1, 4H)  layers 1..L-1
    wcls_ref : (1, H), bcls_ref: (1, 1)        classifier
    out_ref  : (B, 1)
    proj_ref : (T*B, 4H) VMEM scratch for the hoisted layer-0 input projection
    """
    H = HIDDEN_DIM
    B = BATCH
    T = SEQ

    # Hoisted: layer-0 input projection (+ bias) for every timestep in a single
    # well-shaped MXU matmul; the serial recurrence only does h @ W_hh.
    proj_ref[...] = (jnp.dot(x_ref[...], wih0_ref[...],
                             preferred_element_type=jnp.float32)
                     + b0_ref[...])                              # (T*B, 4H)

    # Loop invariants hoisted (JAX does not CSE broadcast_in_dim inside loops).
    lens = lens_ref[...]                                         # (B, 1) int32
    br_bc = [jnp.broadcast_to(br_ref[l], (B, 4 * H))
             for l in range(NUM_LAYERS - 1)]                     # (B, 4H) each

    def cell(gates, c_prev):
        # Full-width activations on the (B, 4H) gates vreg (EUP), then static
        # lane extracts of the activated values.  PyTorch gate order i|f|g|o.
        sg = jax.nn.sigmoid(gates)
        tg = jnp.tanh(gates)
        i_g = sg[:, 0 * H:1 * H]
        f_g = sg[:, 1 * H:2 * H]
        g_g = tg[:, 2 * H:3 * H]
        o_g = sg[:, 3 * H:4 * H]
        c = f_g * c_prev + i_g * g_g
        h = o_g * jnp.tanh(c)
        return h, c

    def step(t, carry):
        hs, cs, final_h = carry
        # Layer 0: precomputed input projection + one recurrent matmul.
        row = pl.multiple_of(t * B, B)
        gates0 = (proj_ref[pl.ds(row, B), :]
                  + jnp.dot(hs[0], whh0_ref[...],
                            preferred_element_type=jnp.float32))
        h, c = cell(gates0, cs[0])
        new_hs, new_cs = [h], [c]
        # Layers 1..L-1 fused into the same timestep (inter-layer dropout is
        # identity in eval mode).
        for l in range(NUM_LAYERS - 1):
            gates = (jnp.dot(h, wihr_ref[l],
                             preferred_element_type=jnp.float32)
                     + jnp.dot(hs[l + 1], whhr_ref[l],
                               preferred_element_type=jnp.float32)
                     + br_bc[l])
            h, c = cell(gates, cs[l + 1])
            new_hs.append(h)
            new_cs.append(c)
        # Online gather: top-layer hidden at t == len-1 (one-hot over t, so
        # accumulate-into-zeros is exact).  No (T, B) mask, no post-loop reduce.
        sel = (lens == t + 1).astype(jnp.float32)                # (B, 1)
        final_h = final_h + sel * h
        return tuple(new_hs), tuple(new_cs), final_h

    zero = jnp.zeros((B, H), jnp.float32)
    init = (tuple(zero for _ in range(NUM_LAYERS)),
            tuple(zero for _ in range(NUM_LAYERS)),
            zero)
    # T is static and small -> fully unroll for LLO scheduling visibility.
    _, _, final_h = lax.fori_loop(0, T, step, init, unroll=True)

    # Classifier: Dropout (identity, eval) -> Linear(H, 1) -> Sigmoid, done as
    # a VPU multiply + lane reduce (avoids an N=1 MXU matmul / lane-sparse path).
    logits = (jnp.sum(final_h * wcls_ref[...], axis=-1, keepdims=True)
              + bcls_ref[...])
    out_ref[...] = jax.nn.sigmoid(logits)                        # (B, 1)


def lstm_net_forward(params, token_ids, context_lens):
    """Embedding gather + layout plumbing outside; LSTM recurrence,
    length-gather and classifier run in a single Pallas kernel invocation."""
    x = jnp.take(params["embedding"], token_ids, axis=0).astype(jnp.float32)
    B, T, E = x.shape
    # Time-major, flattened: row t*B + b is (sequence b, timestep t) so the
    # kernel hoists the layer-0 projection into one (T*B, E) x (E, 4H) matmul
    # and reads (B, 4H) rows per step.
    x_tm = jnp.transpose(x, (1, 0, 2)).reshape(T * B, E)
    lens = context_lens.reshape(B, 1).astype(jnp.int32)

    vmem = pl.BlockSpec(memory_space=pltpu.MemorySpace.VMEM)
    args = (x_tm, lens,
            params["wih0"], params["whh0"], params["b0"],
            params["wihr"], params["whhr"], params["br"],
            params["wcls"].T, params["bcls"])
    return pl.pallas_call(
        _lstm_net_kernel,
        out_shape=jax.ShapeDtypeStruct((B, 1), jnp.float32),
        in_specs=[vmem] * len(args),
        out_specs=vmem,
        scratch_shapes=[pltpu.VMEM((T * B, 4 * HIDDEN_DIM), jnp.float32)],
    )(*args)


def init_params(key):
    """Deterministic synthetic parameters matching nn.LSTM / nn.Linear shapes."""
    H = HIDDEN_DIM
    k = 1.0 / math.sqrt(H)
    keys = jax.random.split(key, 11)

    def u(kk, shape):
        return jax.random.uniform(kk, shape, jnp.float32, -k, k)

    embedding = jax.random.normal(keys[0], (VOCAB, EMB_DIM), jnp.float32)
    # Layer 0: weight_ih (4H, E), weight_hh (4H, H) -> stored transposed.
    wih0 = u(keys[1], (4 * H, EMB_DIM)).T                            # (E, 4H)
    whh0 = u(keys[2], (4 * H, H)).T                                  # (H, 4H)
    b0 = (u(keys[3], (4 * H,)) + u(keys[4], (4 * H,)))[None, :]      # (1, 4H)
    # Layers 1..L-1.
    L1 = NUM_LAYERS - 1
    wihr = jnp.transpose(u(keys[5], (L1, 4 * H, H)), (0, 2, 1))      # (L1, H, 4H)
    whhr = jnp.transpose(u(keys[6], (L1, 4 * H, H)), (0, 2, 1))      # (L1, H, 4H)
    br = (u(keys[7], (L1, 4 * H)) + u(keys[8], (L1, 4 * H)))[:, None, :]  # (L1, 1, 4H)
    # Classifier Linear(H, 1).
    wcls = u(keys[9], (1, H)).T                                      # (H, 1)
    bcls = u(keys[10], (1, 1))
    return dict(embedding=embedding, wih0=wih0, whh0=whh0, b0=b0,
                wihr=wihr, whhr=whhr, br=br, wcls=wcls, bcls=bcls)


def reference_forward(params, token_ids, context_lens):
    """Pure-JAX reference with identical math (eval-mode PyTorch semantics)."""
    H = HIDDEN_DIM
    x = jnp.take(params["embedding"], token_ids, axis=0).astype(jnp.float32)
    B, T, _ = x.shape

    def run_layer(seq, wih_t, whh_t, b):
        def step(carry, x_t):
            h, c = carry
            gates = x_t @ wih_t + h @ whh_t + b
            i = jax.nn.sigmoid(gates[:, :H])
            f = jax.nn.sigmoid(gates[:, H:2 * H])
            g = jnp.tanh(gates[:, 2 * H:3 * H])
            o = jax.nn.sigmoid(gates[:, 3 * H:])
            c = f * c + i * g
            h = o * jnp.tanh(c)
            return (h, c), h
        init = (jnp.zeros((B, H), jnp.float32), jnp.zeros((B, H), jnp.float32))
        _, hs = lax.scan(step, init, jnp.transpose(seq, (1, 0, 2)))
        return jnp.transpose(hs, (1, 0, 2))

    seq = run_layer(x, params["wih0"], params["whh0"], params["b0"])
    for l in range(NUM_LAYERS - 1):
        seq = run_layer(seq, params["wihr"][l], params["whhr"][l], params["br"][l])
    final_h = seq[jnp.arange(B), context_lens - 1]
    return jax.nn.sigmoid(final_h @ params["wcls"] + params["bcls"])


if __name__ == "__main__":
    key = jax.random.PRNGKey(0)
    k_param, k_tok = jax.random.split(key)
    params = init_params(k_param)
    token_ids = jax.random.randint(k_tok, (BATCH, SEQ), 0, VOCAB, dtype=jnp.int32)
    context_lens = jnp.array([5, 8], dtype=jnp.int32)  # per-sequence valid lengths

    out = lstm_net_forward(params, token_ids, context_lens)
    out = jax.block_until_ready(out)

    ref = reference_forward(params, token_ids, context_lens)
    assert out.shape == (BATCH, 1), out.shape
    np.testing.assert_allclose(np.asarray(out), np.asarray(ref), rtol=1e-3, atol=1e-3)
    print("KERNEL_OK")
</pallas_src>

<mosaic_0001>
module attributes {stable_mosaic.version = 11 : i64} {
  func.func @_lstm_net_kernel(%arg0: memref<16x16xf32, #tpu.memory_space<vmem>>, %arg1: memref<2x1xi32, #tpu.memory_space<vmem>>, %arg2: memref<16x128xf32, #tpu.memory_space<vmem>>, %arg3: memref<32x128xf32, #tpu.memory_space<vmem>>, %arg4: memref<1x128xf32, #tpu.memory_space<vmem>>, %arg5: memref<1x32x128xf32, #tpu.memory_space<vmem>>, %arg6: memref<1x32x128xf32, #tpu.memory_space<vmem>>, %arg7: memref<1x1x128xf32, #tpu.memory_space<vmem>>, %arg8: memref<1x32xf32, #tpu.memory_space<vmem>>, %arg9: memref<1x1xf32, #tpu.memory_space<vmem>>, %arg10: memref<2x1xf32, #tpu.memory_space<vmem>>, %arg11: memref<16x128xf32, #tpu.memory_space<vmem>>) attributes {dimension_semantics = [], scalar_prefetch = 0 : i64, scratch_operands = 1 : i64, tpu.core_type = #tpu.core_type<tc>} {
    %c0 = arith.constant 0 : index
    %c0_0 = arith.constant 0 : index
    %0 = vector.load %arg0[%c0, %c0_0] : memref<16x16xf32, #tpu.memory_space<vmem>>, vector<16x16xf32>
    %c0_1 = arith.constant 0 : index
    %c0_2 = arith.constant 0 : index
    %1 = vector.load %arg2[%c0_1, %c0_2] : memref<16x128xf32, #tpu.memory_space<vmem>>, vector<16x128xf32>
    %cst = arith.constant dense<0.000000e+00> : vector<16x128xf32>
    %2 = tpu.matmul %0, %1, %cst {dimension_numbers = #tpu.dot_dimension_numbers<[1], [0], [0], [1], [0, 0, 1, 1], [], []>} : vector<16x16xf32>, vector<16x128xf32>, vector<16x128xf32> -> vector<16x128xf32>
    %c0_3 = arith.constant 0 : index
    %c0_4 = arith.constant 0 : index
    %3 = vector.load %arg4[%c0_3, %c0_4] : memref<1x128xf32, #tpu.memory_space<vmem>>, vector<1x128xf32>
    %4 = vector.broadcast %3 : vector<1x128xf32> to vector<16x128xf32>
    %5 = arith.addf %2, %4 : vector<16x128xf32>
    %c0_5 = arith.constant 0 : index
    %c0_6 = arith.constant 0 : index
    %6 = vector.load %arg11[%c0_5, %c0_6] : memref<16x128xf32, #tpu.memory_space<vmem>>, vector<16x128xf32>
    tpu.vector_store %arg11[%c0_5, %c0_6], %5 {strides = array<i32>} : memref<16x128xf32, #tpu.memory_space<vmem>>, vector<16x128xf32>,
    %c0_7 = arith.constant 0 : index
    %c0_8 = arith.constant 0 : index
    %7 = vector.load %arg1[%c0_7, %c0_8] : memref<2x1xi32, #tpu.memory_space<vmem>>, vector<2x1xi32>
    %c0_9 = arith.constant 0 : index
    %c0_10 = arith.constant 0 : index
    %c0_11 = arith.constant 0 : index
    %8 = vector.load %arg7[%c0_9, %c0_10, %c0_11] : memref<1x1x128xf32, #tpu.memory_space<vmem>>, vector<1x1x128xf32>
    %9 = vector.shape_cast %8 : vector<1x1x128xf32> to vector<1x128xf32>
    %10 = vector.shape_cast %9 : vector<1x128xf32> to vector<1x128xf32>
    %11 = vector.broadcast %10 : vector<1x128xf32> to vector<2x128xf32>
    %cst_12 = arith.constant 0.000000e+00 : f32
    %12 = vector.broadcast %cst_12 : f32 to vector<2x32xf32>
    %c0_i32 = arith.constant 0 : i32
    %c2_i32 = arith.constant 2 : i32
    %13 = arith.muli %c0_i32, %c2_i32 : i32
    %14 = tpu.assume_multiple %13, 2 : i32
    %15 = arith.index_cast %14 : i32 to index
    %c0_13 = arith.constant 0 : index
    %16 = vector.load %arg11[%15, %c0_13] : memref<16x128xf32, #tpu.memory_space<vmem>>, vector<2x128xf32>
    %c0_14 = arith.constant 0 : index
    %c0_15 = arith.constant 0 : index
    %17 = vector.load %arg3[%c0_14, %c0_15] : memref<32x128xf32, #tpu.memory_space<vmem>>, vector<32x128xf32>
    %cst_16 = arith.constant dense<0.000000e+00> : vector<2x128xf32>
    %18 = tpu.matmul %12, %17, %cst_16 {dimension_numbers = #tpu.dot_dimension_numbers<[1], [0], [0], [1], [0, 0, 1, 1], [], []>} : vector<2x32xf32>, vector<32x128xf32>, vector<2x128xf32> -> vector<2x128xf32>
    %19 = arith.addf %16, %18 : vector<2x128xf32>
    %20 = arith.negf %19 : vector<2x128xf32>
    %21 = math.exp %20 : vector<2x128xf32>
    %cst_17 = arith.constant 1.000000e+00 : f32
    %22 = vector.broadcast %cst_17 : f32 to vector<2x128xf32>
    %23 = arith.addf %22, %21 : vector<2x128xf32>
    %24 = arith.divf %22, %23 : vector<2x128xf32>
    %25 = math.tanh %19 : vector<2x128xf32>
    %26 = vector.extract_strided_slice %24 {offsets = [0, 0], sizes = [2, 32], strides = [1, 1]} : vector<2x128xf32> to vector<2x32xf32>
    %27 = vector.extract_strided_slice %24 {offsets = [0, 32], sizes = [2, 32], strides = [1, 1]} : vector<2x128xf32> to vector<2x32xf32>
    %28 = vector.extract_strided_slice %25 {offsets = [0, 64], sizes = [2, 32], strides = [1, 1]} : vector<2x128xf32> to vector<2x32xf32>
    %29 = vector.extract_strided_slice %24 {offsets = [0, 96], sizes = [2, 32], strides = [1, 1]} : vector<2x128xf32> to vector<2x32xf32>
    %30 = arith.mulf %27, %12 : vector<2x32xf32>
    %31 = arith.mulf %26, %28 : vector<2x32xf32>
    %32 = arith.addf %30, %31 : vector<2x32xf32>
    %33 = math.tanh %32 : vector<2x32xf32>
    %34 = arith.mulf %29, %33 : vector<2x32xf32>
    %c0_18 = arith.constant 0 : index
    %c0_19 = arith.constant 0 : index
    %c0_20 = arith.constant 0 : index
    %35 = vector.load %arg5[%c0_18, %c0_19, %c0_20] : memref<1x32x128xf32, #tpu.memory_space<vmem>>, vector<1x32x128xf32>
    %36 = vector.shape_cast %35 : vector<1x32x128xf32> to vector<32x128xf32>
    %cst_21 = arith.constant dense<0.000000e+00> : vector<2x128xf32>
    %37 = tpu.matmul %34, %36, %cst_21 {dimension_numbers = #tpu.dot_dimension_numbers<[1], [0], [0], [1], [0, 0, 1, 1], [], []>} : vector<2x32xf32>, vector<32x128xf32>, vector<2x128xf32> -> vector<2x128xf32>
    %c0_22 = arith.constant 0 : index
    %c0_23 = arith.constant 0 : index
    %c0_24 = arith.constant 0 : index
    %38 = vector.load %arg6[%c0_22, %c0_23, %c0_24] : memref<1x32x128xf32, #tpu.memory_space<vmem>>, vector<1x32x128xf32>
    %39 = vector.shape_cast %38 : vector<1x32x128xf32> to vector<32x128xf32>
    %cst_25 = arith.constant dense<0.000000e+00> : vector<2x128xf32>
    %40 = tpu.matmul %12, %39, %cst_25 {dimension_numbers = #tpu.dot_dimension_numbers<[1], [0], [0], [1], [0, 0, 1, 1], [], []>} : vector<2x32xf32>, vector<32x128xf32>, vector<2x128xf32> -> vector<2x128xf32>
    %41 = arith.addf %37, %40 : vector<2x128xf32>
    %42 = arith.addf %41, %11 : vector<2x128xf32>
    %43 = arith.negf %42 : vector<2x128xf32>
    %44 = math.exp %43 : vector<2x128xf32>
    %cst_26 = arith.constant 1.000000e+00 : f32
    %45 = vector.broadcast %cst_26 : f32 to vector<2x128xf32>
    %46 = arith.addf %45, %44 : vector<2x128xf32>
    %47 = arith.divf %45, %46 : vector<2x128xf32>
    %48 = math.tanh %42 : vector<2x128xf32>
    %49 = vector.extract_strided_slice %47 {offsets = [0, 0], sizes = [2, 32], strides = [1, 1]} : vector<2x128xf32> to vector<2x32xf32>
    %50 = vector.extract_strided_slice %47 {offsets = [0, 32], sizes = [2, 32], strides = [1, 1]} : vector<2x128xf32> to vector<2x32xf32>
    %51 = vector.extract_strided_slice %48 {offsets = [0, 64], sizes = [2, 32], strides = [1, 1]} : vector<2x128xf32> to vector<2x32xf32>
    %52 = vector.extract_strided_slice %47 {offsets = [0, 96], sizes = [2, 32], strides = [1, 1]} : vector<2x128xf32> to vector<2x32xf32>
    %53 = arith.mulf %50, %12 : vector<2x32xf32>
    %54 = arith.mulf %49, %51 : vector<2x32xf32>
    %55 = arith.addf %53, %54 : vector<2x32xf32>
    %56 = math.tanh %55 : vector<2x32xf32>
    %57 = arith.mulf %52, %56 : vector<2x32xf32>
    %c1_i32 = arith.constant 1 : i32
    %58 = arith.addi %c0_i32, %c1_i32 : i32
    %59 = vector.broadcast %58 : i32 to vector<2x1xi32>
    %60 = arith.cmpi eq, %7, %59 : vector<2x1xi32>
    %61 = arith.extui %60 : vector<2x1xi1> to vector<2x1xi32>
    %62 = arith.sitofp %61 : vector<2x1xi32> to vector<2x1xf32>
    %63 = vector.broadcast %62 : vector<2x1xf32> to vector<2x32xf32>
    %64 = arith.mulf %63, %57 : vector<2x32xf32>
    %65 = arith.addf %12, %64 : vector<2x32xf32>
    %c1_i32_27 = arith.constant 1 : i32
    %c2_i32_28 = arith.constant 2 : i32
    %66 = arith.muli %c1_i32_27, %c2_i32_28 : i32
    %67 = tpu.assume_multiple %66, 2 : i32
    %68 = arith.index_cast %67 : i32 to index
    %c0_29 = arith.constant 0 : index
    %69 = vector.load %arg11[%68, %c0_29] : memref<16x128xf32, #tpu.memory_space<vmem>>, vector<2x128xf32>
    %c0_30 = arith.constant 0 : index
    %c0_31 = arith.constant 0 : index
    %70 = vector.load %arg3[%c0_30, %c0_31] : memref<32x128xf32, #tpu.memory_space<vmem>>, vector<32x128xf32>
    %cst_32 = arith.constant dense<0.000000e+00> : vector<2x128xf32>
    %71 = tpu.matmul %34, %70, %cst_32 {dimension_numbers = #tpu.dot_dimension_numbers<[1], [0], [0], [1], [0, 0, 1, 1], [], []>} : vector<2x32xf32>, vector<32x128xf32>, vector<2x128xf32> -> vector<2x128xf32>
    %72 = arith.addf %69, %71 : vector<2x128xf32>
    %73 = arith.negf %72 : vector<2x128xf32>
    %74 = math.exp %73 : vector<2x128xf32>
    %cst_33 = arith.constant 1.000000e+00 : f32
    %75 = vector.broadcast %cst_33 : f32 to vector<2x128xf32>
    %76 = arith.addf %75, %74 : vector<2x128xf32>
    %77 = arith.divf %75, %76 : vector<2x128xf32>
    %78 = math.tanh %72 : vector<2x128xf32>
    %79 = vector.extract_strided_slice %77 {offsets = [0, 0], sizes = [2, 32], strides = [1, 1]} : vector<2x128xf32> to vector<2x32xf32>
    %80 = vector.extract_strided_slice %77 {offsets = [0, 32], sizes = [2, 32], strides = [1, 1]} : vector<2x128xf32> to vector<2x32xf32>
    %81 = vector.extract_strided_slice %78 {offsets = [0, 64], sizes = [2, 32], strides = [1, 1]} : vector<2x128xf32> to vector<2x32xf32>
    %82 = vector.extract_strided_slice %77 {offsets = [0, 96], sizes = [2, 32], strides = [1, 1]} : vector<2x128xf32> to vector<2x32xf32>
    %83 = arith.mulf %80, %32 : vector<2x32xf32>
    %84 = arith.mulf %79, %81 : vector<2x32xf32>
    %85 = arith.addf %83, %84 : vector<2x32xf32>
    %86 = math.tanh %85 : vector<2x32xf32>
    %87 = arith.mulf %82, %86 : vector<2x32xf32>
    %c0_34 = arith.constant 0 : index
    %c0_35 = arith.constant 0 : index
    %c0_36 = arith.constant 0 : index
    %88 = vector.load %arg5[%c0_34, %c0_35, %c0_36] : memref<1x32x128xf32, #tpu.memory_space<vmem>>, vector<1x32x128xf32>
    %89 = vector.shape_cast %88 : vector<1x32x128xf32> to vector<32x128xf32>
    %cst_37 = arith.constant dense<0.000000e+00> : vector<2x128xf32>
    %90 = tpu.matmul %87, %89, %cst_37 {dimension_numbers = #tpu.dot_dimension_numbers<[1], [0], [0], [1], [0, 0, 1, 1], [], []>} : vector<2x32xf32>, vector<32x128xf32>, vector<2x128xf32> -> vector<2x128xf32>
    %c0_38 = arith.constant 0 : index
    %c0_39 = arith.constant 0 : index
    %c0_40 = arith.constant 0 : index
    %91 = vector.load %arg6[%c0_38, %c0_39, %c0_40] : memref<1x32x128xf32, #tpu.memory_space<vmem>>, vector<1x32x128xf32>
    %92 = vector.shape_cast %91 : vector<1x32x128xf32> to vector<32x128xf32>
    %cst_41 = arith.constant dense<0.000000e+00> : vector<2x128xf32>
    %93 = tpu.matmul %57, %92, %cst_41 {dimension_numbers = #tpu.dot_dimension_numbers<[1], [0], [0], [1], [0, 0, 1, 1], [], []>} : vector<2x32xf32>, vector<32x128xf32>, vector<2x128xf32> -> vector<2x128xf32>
    %94 = arith.addf %90, %93 : vector<2x128xf32>
    %95 = arith.addf %94, %11 : vector<2x128xf32>
    %96 = arith.negf %95 : vector<2x128xf32>
    %97 = math.exp %96 : vector<2x128xf32>
    %cst_42 = arith.constant 1.000000e+00 : f32
    %98 = vector.broadcast %cst_42 : f32 to vector<2x128xf32>
    %99 = arith.addf %98, %97 : vector<2x128xf32>
    %100 = arith.divf %98, %99 : vector<2x128xf32>
    %101 = math.tanh %95 : vector<2x128xf32>
    %102 = vector.extract_strided_slice %100 {offsets = [0, 0], sizes = [2, 32], strides = [1, 1]} : vector<2x128xf32> to vector<2x32xf32>
    %103 = vector.extract_strided_slice %100 {offsets = [0, 32], sizes = [2, 32], strides = [1, 1]} : vector<2x128xf32> to vector<2x32xf32>
    %104 = vector.extract_strided_slice %101 {offsets = [0, 64], sizes = [2, 32], strides = [1, 1]} : vector<2x128xf32> to vector<2x32xf32>
    %105 = vector.extract_strided_slice %100 {offsets = [0, 96], sizes = [2, 32], strides = [1, 1]} : vector<2x128xf32> to vector<2x32xf32>
    %106 = arith.mulf %103, %55 : vector<2x32xf32>
    %107 = arith.mulf %102, %104 : vector<2x32xf32>
    %108 = arith.addf %106, %107 : vector<2x32xf32>
    %109 = math.tanh %108 : vector<2x32xf32>
    %110 = arith.mulf %105, %109 : vector<2x32xf32>
    %c1_i32_43 = arith.constant 1 : i32
    %111 = arith.addi %c1_i32_27, %c1_i32_43 : i32
    %112 = vector.broadcast %111 : i32 to vector<2x1xi32>
    %113 = arith.cmpi eq, %7, %112 : vector<2x1xi32>
    %114 = arith.extui %113 : vector<2x1xi1> to vector<2x1xi32>
    %115 = arith.sitofp %114 : vector<2x1xi32> to vector<2x1xf32>
    %116 = vector.broadcast %115 : vector<2x1xf32> to vector<2x32xf32>
    %117 = arith.mulf %116, %110 : vector<2x32xf32>
    %118 = arith.addf %65, %117 : vector<2x32xf32>
    %c2_i32_44 = arith.constant 2 : i32
    %c2_i32_45 = arith.constant 2 : i32
    %119 = arith.muli %c2_i32_44, %c2_i32_45 : i32
    %120 = tpu.assume_multiple %119, 2 : i32
    %121 = arith.index_cast %120 : i32 to index
    %c0_46 = arith.constant 0 : index
    %122 = vector.load %arg11[%121, %c0_46] : memref<16x128xf32, #tpu.memory_space<vmem>>, vector<2x128xf32>
    %c0_47 = arith.constant 0 : index
    %c0_48 = arith.constant 0 : index
    %123 = vector.load %arg3[%c0_47, %c0_48] : memref<32x128xf32, #tpu.memory_space<vmem>>, vector<32x128xf32>
    %cst_49 = arith.constant dense<0.000000e+00> : vector<2x128xf32>
    %124 = tpu.matmul %87, %123, %cst_49 {dimension_numbers = #tpu.dot_dimension_numbers<[1], [0], [0], [1], [0, 0, 1, 1], [], []>} : vector<2x32xf32>, vector<32x128xf32>, vector<2x128xf32> -> vector<2x128xf32>
    %125 = arith.addf %122, %124 : vector<2x128xf32>
    %126 = arith.negf %125 : vector<2x128xf32>
    %127 = math.exp %126 : vector<2x128xf32>
    %cst_50 = arith.constant 1.000000e+00 : f32
    %128 = vector.broadcast %cst_50 : f32 to vector<2x128xf32>
    %129 = arith.addf %128, %127 : vector<2x128xf32>
    %130 = arith.divf %128, %129 : vector<2x128xf32>
    %131 = math.tanh %125 : vector<2x128xf32>
    %132 = vector.extract_strided_slice %130 {offsets = [0, 0], sizes = [2, 32], strides = [1, 1]} : vector<2x128xf32> to vector<2x32xf32>
    %133 = vector.extract_strided_slice %130 {offsets = [0, 32], sizes = [2, 32], strides = [1, 1]} : vector<2x128xf32> to vector<2x32xf32>
    %134 = vector.extract_strided_slice %131 {offsets = [0, 64], sizes = [2, 32], strides = [1, 1]} : vector<2x128xf32> to vector<2x32xf32>
    %135 = vector.extract_strided_slice %130 {offsets = [0, 96], sizes = [2, 32], strides = [1, 1]} : vector<2x128xf32> to vector<2x32xf32>
    %136 = arith.mulf %133, %85 : vector<2x32xf32>
    %137 = arith.mulf %132, %134 : vector<2x32xf32>
    %138 = arith.addf %136, %137 : vector<2x32xf32>
    %139 = math.tanh %138 : vector<2x32xf32>
    %140 = arith.mulf %135, %139 : vector<2x32xf32>
    %c0_51 = arith.constant 0 : index
    %c0_52 = arith.constant 0 : index
    %c0_53 = arith.constant 0 : index
    %141 = vector.load %arg5[%c0_51, %c0_52, %c0_53] : memref<1x32x128xf32, #tpu.memory_space<vmem>>, vector<1x32x128xf32>
    %142 = vector.shape_cast %141 : vector<1x32x128xf32> to vector<32x128xf32>
    %cst_54 = arith.constant dense<0.000000e+00> : vector<2x128xf32>
    %143 = tpu.matmul %140, %142, %cst_54 {dimension_numbers = #tpu.dot_dimension_numbers<[1], [0], [0], [1], [0, 0, 1, 1], [], []>} : vector<2x32xf32>, vector<32x128xf32>, vector<2x128xf32> -> vector<2x128xf32>
    %c0_55 = arith.constant 0 : index
    %c0_56 = arith.constant 0 : index
    %c0_57 = arith.constant 0 : index
    %144 = vector.load %arg6[%c0_55, %c0_56, %c0_57] : memref<1x32x128xf32, #tpu.memory_space<vmem>>, vector<1x32x128xf32>
    %145 = vector.shape_cast %144 : vector<1x32x128xf32> to vector<32x128xf32>
    %cst_58 = arith.constant dense<0.000000e+00> : vector<2x128xf32>
    %146 = tpu.matmul %110, %145, %cst_58 {dimension_numbers = #tpu.dot_dimension_numbers<[1], [0], [0], [1], [0, 0, 1, 1], [], []>} : vector<2x32xf32>, vector<32x128xf32>, vector<2x128xf32> -> vector<2x128xf32>
    %147 = arith.addf %143, %146 : vector<2x128xf32>
    %148 = arith.addf %147, %11 : vector<2x128xf32>
    %149 = arith.negf %148 : vector<2x128xf32>
    %150 = math.exp %149 : vector<2x128xf32>
    %cst_59 = arith.constant 1.000000e+00 : f32
    %151 = vector.broadcast %cst_59 : f32 to vector<2x128xf32>
    %152 = arith.addf %151, %150 : vector<2x128xf32>
    %153 = arith.divf %151, %152 : vector<2x128xf32>
    %154 = math.tanh %148 : vector<2x128xf32>
    %155 = vector.extract_strided_slice %153 {offsets = [0, 0], sizes = [2, 32], strides = [1, 1]} : vector<2x128xf32> to vector<2x32xf32>
    %156 = vector.extract_strided_slice %153 {offsets = [0, 32], sizes = [2, 32], strides = [1, 1]} : vector<2x128xf32> to vector<2x32xf32>
    %157 = vector.extract_strided_slice %154 {offsets = [0, 64], sizes = [2, 32], strides = [1, 1]} : vector<2x128xf32> to vector<2x32xf32>
    %158 = vector.extract_strided_slice %153 {offsets = [0, 96], sizes = [2, 32], strides = [1, 1]} : vector<2x128xf32> to vector<2x32xf32>
    %159 = arith.mulf %156, %108 : vector<2x32xf32>
    %160 = arith.mulf %155, %157 : vector<2x32xf32>
    %161 = arith.addf %159, %160 : vector<2x32xf32>
    %162 = math.tanh %161 : vector<2x32xf32>
    %163 = arith.mulf %158, %162 : vector<2x32xf32>
    %c1_i32_60 = arith.constant 1 : i32
    %164 = arith.addi %c2_i32_44, %c1_i32_60 : i32
    %165 = vector.broadcast %164 : i32 to vector<2x1xi32>
    %166 = arith.cmpi eq, %7, %165 : vector<2x1xi32>
    %167 = arith.extui %166 : vector<2x1xi1> to vector<2x1xi32>
    %168 = arith.sitofp %167 : vector<2x1xi32> to vector<2x1xf32>
    %169 = vector.broadcast %168 : vector<2x1xf32> to vector<2x32xf32>
    %170 = arith.mulf %169, %163 : vector<2x32xf32>
    %171 = arith.addf %118, %170 : vector<2x32xf32>
    %c3_i32 = arith.constant 3 : i32
    %c2_i32_61 = arith.constant 2 : i32
    %172 = arith.muli %c3_i32, %c2_i32_61 : i32
    %173 = tpu.assume_multiple %172, 2 : i32
    %174 = arith.index_cast %173 : i32 to index
    %c0_62 = arith.constant 0 : index
    %175 = vector.load %arg11[%174, %c0_62] : memref<16x128xf32, #tpu.memory_space<vmem>>, vector<2x128xf32>
    %c0_63 = arith.constant 0 : index
    %c0_64 = arith.constant 0 : index
    %176 = vector.load %arg3[%c0_63, %c0_64] : memref<32x128xf32, #tpu.memory_space<vmem>>, vector<32x128xf32>
    %cst_65 = arith.constant dense<0.000000e+00> : vector<2x128xf32>
    %177 = tpu.matmul %140, %176, %cst_65 {dimension_numbers = #tpu.dot_dimension_numbers<[1], [0], [0], [1], [0, 0, 1, 1], [], []>} : vector<2x32xf32>, vector<32x128xf32>, vector<2x128xf32> -> vector<2x128xf32>
    %178 = arith.addf %175, %177 : vector<2x128xf32>
    %179 = arith.negf %178 : vector<2x128xf32>
    %180 = math.exp %179 : vector<2x128xf32>
    %cst_66 = arith.constant 1.000000e+00 : f32
    %181 = vector.broadcast %cst_66 : f32 to vector<2x128xf32>
    %182 = arith.addf %181, %180 : vector<2x128xf32>
    %183 = arith.divf %181, %182 : vector<2x128xf32>
    %184 = math.tanh %178 : vector<2x128xf32>
    %185 = vector.extract_strided_slice %183 {offsets = [0, 0], sizes = [2, 32], strides = [1, 1]} : vector<2x128xf32> to vector<2x32xf32>
    %186 = vector.extract_strided_slice %183 {offsets = [0, 32], sizes = [2, 32], strides = [1, 1]} : vector<2x128xf32> to vector<2x32xf32>
    %187 = vector.extract_strided_slice %184 {offsets = [0, 64], sizes = [2, 32], strides = [1, 1]} : vector<2x128xf32> to vector<2x32xf32>
    %188 = vector.extract_strided_slice %183 {offsets = [0, 96], sizes = [2, 32], strides = [1, 1]} : vector<2x128xf32> to vector<2x32xf32>
    %189 = arith.mulf %186, %138 : vector<2x32xf32>
    %190 = arith.mulf %185, %187 : vector<2x32xf32>
    %191 = arith.addf %189, %190 : vector<2x32xf32>
    %192 = math.tanh %191 : vector<2x32xf32>
    %193 = arith.mulf %188, %192 : vector<2x32xf32>
    %c0_67 = arith.constant 0 : index
    %c0_68 = arith.constant 0 : index
    %c0_69 = arith.constant 0 : index
    %194 = vector.load %arg5[%c0_67, %c0_68, %c0_69] : memref<1x32x128xf32, #tpu.memory_space<vmem>>, vector<1x32x128xf32>
    %195 = vector.shape_cast %194 : vector<1x32x128xf32> to vector<32x128xf32>
    %cst_70 = arith.constant dense<0.000000e+00> : vector<2x128xf32>
    %196 = tpu.matmul %193, %195, %cst_70 {dimension_numbers = #tpu.dot_dimension_numbers<[1], [0], [0], [1], [0, 0, 1, 1], [], []>} : vector<2x32xf32>, vector<32x128xf32>, vector<2x128xf32> -> vector<2x128xf32>
    %c0_71 = arith.constant 0 : index
    %c0_72 = arith.constant 0 : index
    %c0_73 = arith.constant 0 : index
    %197 = vector.load %arg6[%c0_71, %c0_72, %c0_73] : memref<1x32x128xf32, #tpu.memory_space<vmem>>, vector<1x32x128xf32>
    %198 = vector.shape_cast %197 : vector<1x32x128xf32> to vector<32x128xf32>
    %cst_74 = arith.constant dense<0.000000e+00> : vector<2x128xf32>
    %199 = tpu.matmul %163, %198, %cst_74 {dimension_numbers = #tpu.dot_dimension_numbers<[1], [0], [0], [1], [0, 0, 1, 1], [], []>} : vector<2x32xf32>, vector<32x128xf32>, vector<2x128xf32> -> vector<2x128xf32>
    %200 = arith.addf %196, %199 : vector<2x128xf32>
    %201 = arith.addf %200, %11 : vector<2x128xf32>
    %202 = arith.negf %201 : vector<2x128xf32>
    %203 = math.exp %202 : vector<2x128xf32>
    %cst_75 = arith.constant 1.000000e+00 : f32
    %204 = vector.broadcast %cst_75 : f32 to vector<2x128xf32>
    %205 = arith.addf %204, %203 : vector<2x128xf32>
    %206 = arith.divf %204, %205 : vector<2x128xf32>
    %207 = math.tanh %201 : vector<2x128xf32>
    %208 = vector.extract_strided_slice %206 {offsets = [0, 0], sizes = [2, 32], strides = [1, 1]} : vector<2x128xf32> to vector<2x32xf32>
    %209 = vector.extract_strided_slice %206 {offsets = [0, 32], sizes = [2, 32], strides = [1, 1]} : vector<2x128xf32> to vector<2x32xf32>
    %210 = vector.extract_strided_slice %207 {offsets = [0, 64], sizes = [2, 32], strides = [1, 1]} : vector<2x128xf32> to vector<2x32xf32>
    %211 = vector.extract_strided_slice %206 {offsets = [0, 96], sizes = [2, 32], strides = [1, 1]} : vector<2x128xf32> to vector<2x32xf32>
    %212 = arith.mulf %209, %161 : vector<2x32xf32>
    %213 = arith.mulf %208, %210 : vector<2x32xf32>
    %214 = arith.addf %212, %213 : vector<2x32xf32>
    %215 = math.tanh %214 : vector<2x32xf32>
    %216 = arith.mulf %211, %215 : vector<2x32xf32>
    %c1_i32_76 = arith.constant 1 : i32
    %217 = arith.addi %c3_i32, %c1_i32_76 : i32
    %218 = vector.broadcast %217 : i32 to vector<2x1xi32>
    %219 = arith.cmpi eq, %7, %218 : vector<2x1xi32>
    %220 = arith.extui %219 : vector<2x1xi1> to vector<2x1xi32>
    %221 = arith.sitofp %220 : vector<2x1xi32> to vector<2x1xf32>
    %222 = vector.broadcast %221 : vector<2x1xf32> to vector<2x32xf32>
    %223 = arith.mulf %222, %216 : vector<2x32xf32>
    %224 = arith.addf %171, %223 : vector<2x32xf32>
    %c4_i32 = arith.constant 4 : i32
    %c2_i32_77 = arith.constant 2 : i32
    %225 = arith.muli %c4_i32, %c2_i32_77 : i32
    %226 = tpu.assume_multiple %225, 2 : i32
    %227 = arith.index_cast %226 : i32 to index
    %c0_78 = arith.constant 0 : index
    %228 = vector.load %arg11[%227, %c0_78] : memref<16x128xf32, #tpu.memory_space<vmem>>, vector<2x128xf32>
    %c0_79 = arith.constant 0 : index
    %c0_80 = arith.constant 0 : index
    %229 = vector.load %arg3[%c0_79, %c0_80] : memref<32x128xf32, #tpu.memory_space<vmem>>, vector<32x128xf32>
    %cst_81 = arith.constant dense<0.000000e+00> : vector<2x128xf32>
    %230 = tpu.matmul %193, %229, %cst_81 {dimension_numbers = #tpu.dot_dimension_numbers<[1], [0], [0], [1], [0, 0, 1, 1], [], []>} : vector<2x32xf32>, vector<32x128xf32>, vector<2x128xf32> -> vector<2x128xf32>
    %231 = arith.addf %228, %230 : vector<2x128xf32>
    %232 = arith.negf %231 : vector<2x128xf32>
    %233 = math.exp %232 : vector<2x128xf32>
    %cst_82 = arith.constant 1.000000e+00 : f32
    %234 = vector.broadcast %cst_82 : f32 to vector<2x128xf32>
    %235 = arith.addf %234, %233 : vector<2x128xf32>
    %236 = arith.divf %234, %235 : vector<2x128xf32>
    %237 = math.tanh %231 : vector<2x128xf32>
    %238 = vector.extract_strided_slice %236 {offsets = [0, 0], sizes = [2, 32], strides = [1, 1]} : vector<2x128xf32> to vector<2x32xf32>
    %239 = vector.extract_strided_slice %236 {offsets = [0, 32], sizes = [2, 32], strides = [1, 1]} : vector<2x128xf32> to vector<2x32xf32>
    %240 = vector.extract_strided_slice %237 {offsets = [0, 64], sizes = [2, 32], strides = [1, 1]} : vector<2x128xf32> to vector<2x32xf32>
    %241 = vector.extract_strided_slice %236 {offsets = [0, 96], sizes = [2, 32], strides = [1, 1]} : vector<2x128xf32> to vector<2x32xf32>
    %242 = arith.mulf %239, %191 : vector<2x32xf32>
    %243 = arith.mulf %238, %240 : vector<2x32xf32>
    %244 = arith.addf %242, %243 : vector<2x32xf32>
    %245 = math.tanh %244 : vector<2x32xf32>
    %246 = arith.mulf %241, %245 : vector<2x32xf32>
    %c0_83 = arith.constant 0 : index
    %c0_84 = arith.constant 0 : index
    %c0_85 = arith.constant 0 : index
    %247 = vector.load %arg5[%c0_83, %c0_84, %c0_85] : memref<1x32x128xf32, #tpu.memory_space<vmem>>, vector<1x32x128xf32>
    %248 = vector.shape_cast %247 : vector<1x32x128xf32> to vector<32x128xf32>
    %cst_86 = arith.constant dense<0.000000e+00> : vector<2x128xf32>
    %249 = tpu.matmul %246, %248, %cst_86 {dimension_numbers = #tpu.dot_dimension_numbers<[1], [0], [0], [1], [0, 0, 1, 1], [], []>} : vector<2x32xf32>, vector<32x128xf32>, vector<2x128xf32> -> vector<2x128xf32>
    %c0_87 = arith.constant 0 : index
    %c0_88 = arith.constant 0 : index
    %c0_89 = arith.constant 0 : index
    %250 = vector.load %arg6[%c0_87, %c0_88, %c0_89] : memref<1x32x128xf32, #tpu.memory_space<vmem>>, vector<1x32x128xf32>
    %251 = vector.shape_cast %250 : vector<1x32x128xf32> to vector<32x128xf32>
    %cst_90 = arith.constant dense<0.000000e+00> : vector<2x128xf32>
    %252 = tpu.matmul %216, %251, %cst_90 {dimension_numbers = #tpu.dot_dimension_numbers<[1], [0], [0], [1], [0, 0, 1, 1], [], []>} : vector<2x32xf32>, vector<32x128xf32>, vector<2x128xf32> -> vector<2x128xf32>
    %253 = arith.addf %249, %252 : vector<2x128xf32>
    %254 = arith.addf %253, %11 : vector<2x128xf32>
    %255 = arith.negf %254 : vector<2x128xf32>
    %256 = math.exp %255 : vector<2x128xf32>
    %cst_91 = arith.constant 1.000000e+00 : f32
    %257 = vector.broadcast %cst_91 : f32 to vector<2x128xf32>
    %258 = arith.addf %257, %256 : vector<2x128xf32>
    %259 = arith.divf %257, %258 : vector<2x128xf32>
    %260 = math.tanh %254 : vector<2x128xf32>
    %261 = vector.extract_strided_slice %259 {offsets = [0, 0], sizes = [2, 32], strides = [1, 1]} : vector<2x128xf32> to vector<2x32xf32>
    %262 = vector.extract_strided_slice %259 {offsets = [0, 32], sizes = [2, 32], strides = [1, 1]} : vector<2x128xf32> to vector<2x32xf32>
    %263 = vector.extract_strided_slice %260 {offsets = [0, 64], sizes = [2, 32], strides = [1, 1]} : vector<2x128xf32> to vector<2x32xf32>
    %264 = vector.extract_strided_slice %259 {offsets = [0, 96], sizes = [2, 32], strides = [1, 1]} : vector<2x128xf32> to vector<2x32xf32>
    %265 = arith.mulf %262, %214 : vector<2x32xf32>
    %266 = arith.mulf %261, %263 : vector<2x32xf32>
    %267 = arith.addf %265, %266 : vector<2x32xf32>
    %268 = math.tanh %267 : vector<2x32xf32>
    %269 = arith.mulf %264, %268 : vector<2x32xf32>
    %c1_i32_92 = arith.constant 1 : i32
    %270 = arith.addi %c4_i32, %c1_i32_92 : i32
    %271 = vector.broadcast %270 : i32 to vector<2x1xi32>
    %272 = arith.cmpi eq, %7, %271 : vector<2x1xi32>
    %273 = arith.extui %272 : vector<2x1xi1> to vector<2x1xi32>
    %274 = arith.sitofp %273 : vector<2x1xi32> to vector<2x1xf32>
    %275 = vector.broadcast %274 : vector<2x1xf32> to vector<2x32xf32>
    %276 = arith.mulf %275, %269 : vector<2x32xf32>
    %277 = arith.addf %224, %276 : vector<2x32xf32>
    %c5_i32 = arith.constant 5 : i32
    %c2_i32_93 = arith.constant 2 : i32
    %278 = arith.muli %c5_i32, %c2_i32_93 : i32
    %279 = tpu.assume_multiple %278, 2 : i32
    %280 = arith.index_cast %279 : i32 to index
    %c0_94 = arith.constant 0 : index
    %281 = vector.load %arg11[%280, %c0_94] : memref<16x128xf32, #tpu.memory_space<vmem>>, vector<2x128xf32>
    %c0_95 = arith.constant 0 : index
    %c0_96 = arith.constant 0 : index
    %282 = vector.load %arg3[%c0_95, %c0_96] : memref<32x128xf32, #tpu.memory_space<vmem>>, vector<32x128xf32>
    %cst_97 = arith.constant dense<0.000000e+00> : vector<2x128xf32>
    %283 = tpu.matmul %246, %282, %cst_97 {dimension_numbers = #tpu.dot_dimension_numbers<[1], [0], [0], [1], [0, 0, 1, 1], [], []>} : vector<2x32xf32>, vector<32x128xf32>, vector<2x128xf32> -> vector<2x128xf32>
    %284 = arith.addf %281, %283 : vector<2x128xf32>
    %285 = arith.negf %284 : vector<2x128xf32>
    %286 = math.exp %285 : vector<2x128xf32>
    %cst_98 = arith.constant 1.000000e+00 : f32
    %287 = vector.broadcast %cst_98 : f32 to vector<2x128xf32>
    %288 = arith.addf %287, %286 : vector<2x128xf32>
    %289 = arith.divf %287, %288 : vector<2x128xf32>
    %290 = math.tanh %284 : vector<2x128xf32>
    %291 = vector.extract_strided_slice %289 {offsets = [0, 0], sizes = [2, 32], strides = [1, 1]} : vector<2x128xf32> to vector<2x32xf32>
    %292 = vector.extract_strided_slice %289 {offsets = [0, 32], sizes = [2, 32], strides = [1, 1]} : vector<2x128xf32> to vector<2x32xf32>
    %293 = vector.extract_strided_slice %290 {offsets = [0, 64], sizes = [2, 32], strides = [1, 1]} : vector<2x128xf32> to vector<2x32xf32>
    %294 = vector.extract_strided_slice %289 {offsets = [0, 96], sizes = [2, 32], strides = [1, 1]} : vector<2x128xf32> to vector<2x32xf32>
    %295 = arith.mulf %292, %244 : vector<2x32xf32>
    %296 = arith.mulf %291, %293 : vector<2x32xf32>
    %297 = arith.addf %295, %296 : vector<2x32xf32>
    %298 = math.tanh %297 : vector<2x32xf32>
    %299 = arith.mulf %294, %298 : vector<2x32xf32>
    %c0_99 = arith.constant 0 : index
    %c0_100 = arith.constant 0 : index
    %c0_101 = arith.constant 0 : index
    %300 = vector.load %arg5[%c0_99, %c0_100, %c0_101] : memref<1x32x128xf32, #tpu.memory_space<vmem>>, vector<1x32x128xf32>
    %301 = vector.shape_cast %300 : vector<1x32x128xf32> to vector<32x128xf32>
    %cst_102 = arith.constant dense<0.000000e+00> : vector<2x128xf32>
    %302 = tpu.matmul %299, %301, %cst_102 {dimension_numbers = #tpu.dot_dimension_numbers<[1], [0], [0], [1], [0, 0, 1, 1], [], []>} : vector<2x32xf32>, vector<32x128xf32>, vector<2x128xf32> -> vector<2x128xf32>
    %c0_103 = arith.constant 0 : index
    %c0_104 = arith.constant 0 : index
    %c0_105 = arith.constant 0 : index
    %303 = vector.load %arg6[%c0_103, %c0_104, %c0_105] : memref<1x32x128xf32, #tpu.memory_space<vmem>>, vector<1x32x128xf32>
    %304 = vector.shape_cast %303 : vector<1x32x128xf32> to vector<32x128xf32>
    %cst_106 = arith.constant dense<0.000000e+00> : vector<2x128xf32>
    %305 = tpu.matmul %269, %304, %cst_106 {dimension_numbers = #tpu.dot_dimension_numbers<[1], [0], [0], [1], [0, 0, 1, 1], [], []>} : vector<2x32xf32>, vector<32x128xf32>, vector<2x128xf32> -> vector<2x128xf32>
    %306 = arith.addf %302, %305 : vector<2x128xf32>
    %307 = arith.addf %306, %11 : vector<2x128xf32>
    %308 = arith.negf %307 : vector<2x128xf32>
    %309 = math.exp %308 : vector<2x128xf32>
    %cst_107 = arith.constant 1.000000e+00 : f32
    %310 = vector.broadcast %cst_107 : f32 to vector<2x128xf32>
    %311 = arith.addf %310, %309 : vector<2x128xf32>
    %312 = arith.divf %310, %311 : vector<2x128xf32>
    %313 = math.tanh %307 : vector<2x128xf32>
    %314 = vector.extract_strided_slice %312 {offsets = [0, 0], sizes = [2, 32], strides = [1, 1]} : vector<2x128xf32> to vector<2x32xf32>
    %315 = vector.extract_strided_slice %312 {offsets = [0, 32], sizes = [2, 32], strides = [1, 1]} : vector<2x128xf32> to vector<2x32xf32>
    %316 = vector.extract_strided_slice %313 {offsets = [0, 64], sizes = [2, 32], strides = [1, 1]} : vector<2x128xf32> to vector<2x32xf32>
    %317 = vector.extract_strided_slice %312 {offsets = [0, 96], sizes = [2, 32], strides = [1, 1]} : vector<2x128xf32> to vector<2x32xf32>
    %318 = arith.mulf %315, %267 : vector<2x32xf32>
    %319 = arith.mulf %314, %316 : vector<2x32xf32>
    %320 = arith.addf %318, %319 : vector<2x32xf32>
    %321 = math.tanh %320 : vector<2x32xf32>
    %322 = arith.mulf %317, %321 : vector<2x32xf32>
    %c1_i32_108 = arith.constant 1 : i32
    %323 = arith.addi %c5_i32, %c1_i32_108 : i32
    %324 = vector.broadcast %323 : i32 to vector<2x1xi32>
    %325 = arith.cmpi eq, %7, %324 : vector<2x1xi32>
    %326 = arith.extui %325 : vector<2x1xi1> to vector<2x1xi32>
    %327 = arith.sitofp %326 : vector<2x1xi32> to vector<2x1xf32>
    %328 = vector.broadcast %327 : vector<2x1xf32> to vector<2x32xf32>
    %329 = arith.mulf %328, %322 : vector<2x32xf32>
    %330 = arith.addf %277, %329 : vector<2x32xf32>
    %c6_i32 = arith.constant 6 : i32
    %c2_i32_109 = arith.constant 2 : i32
    %331 = arith.muli %c6_i32, %c2_i32_109 : i32
    %332 = tpu.assume_multiple %331, 2 : i32
    %333 = arith.index_cast %332 : i32 to index
    %c0_110 = arith.constant 0 : index
    %334 = vector.load %arg11[%333, %c0_110] : memref<16x128xf32, #tpu.memory_space<vmem>>, vector<2x128xf32>
    %c0_111 = arith.constant 0 : index
    %c0_112 = arith.constant 0 : index
    %335 = vector.load %arg3[%c0_111, %c0_112] : memref<32x128xf32, #tpu.memory_space<vmem>>, vector<32x128xf32>
    %cst_113 = arith.constant dense<0.000000e+00> : vector<2x128xf32>
    %336 = tpu.matmul %299, %335, %cst_113 {dimension_numbers = #tpu.dot_dimension_numbers<[1], [0], [0], [1], [0, 0, 1, 1], [], []>} : vector<2x32xf32>, vector<32x128xf32>, vector<2x128xf32> -> vector<2x128xf32>
    %337 = arith.addf %334, %336 : vector<2x128xf32>
    %338 = arith.negf %337 : vector<2x128xf32>
    %339 = math.exp %338 : vector<2x128xf32>
    %cst_114 = arith.constant 1.000000e+00 : f32
    %340 = vector.broadcast %cst_114 : f32 to vector<2x128xf32>
    %341 = arith.addf %340, %339 : vector<2x128xf32>
    %342 = arith.divf %340, %341 : vector<2x128xf32>
    %343 = math.tanh %337 : vector<2x128xf32>
    %344 = vector.extract_strided_slice %342 {offsets = [0, 0], sizes = [2, 32], strides = [1, 1]} : vector<2x128xf32> to vector<2x32xf32>
    %345 = vector.extract_strided_slice %342 {offsets = [0, 32], sizes = [2, 32], strides = [1, 1]} : vector<2x128xf32> to vector<2x32xf32>
    %346 = vector.extract_strided_slice %343 {offsets = [0, 64], sizes = [2, 32], strides = [1, 1]} : vector<2x128xf32> to vector<2x32xf32>
    %347 = vector.extract_strided_slice %342 {offsets = [0, 96], sizes = [2, 32], strides = [1, 1]} : vector<2x128xf32> to vector<2x32xf32>
    %348 = arith.mulf %345, %297 : vector<2x32xf32>
    %349 = arith.mulf %344, %346 : vector<2x32xf32>
    %350 = arith.addf %348, %349 : vector<2x32xf32>
    %351 = math.tanh %350 : vector<2x32xf32>
    %352 = arith.mulf %347, %351 : vector<2x32xf32>
    %c0_115 = arith.constant 0 : index
    %c0_116 = arith.constant 0 : index
    %c0_117 = arith.constant 0 : index
    %353 = vector.load %arg5[%c0_115, %c0_116, %c0_117] : memref<1x32x128xf32, #tpu.memory_space<vmem>>, vector<1x32x128xf32>
    %354 = vector.shape_cast %353 : vector<1x32x128xf32> to vector<32x128xf32>
    %cst_118 = arith.constant dense<0.000000e+00> : vector<2x128xf32>
    %355 = tpu.matmul %352, %354, %cst_118 {dimension_numbers = #tpu.dot_dimension_numbers<[1], [0], [0], [1], [0, 0, 1, 1], [], []>} : vector<2x32xf32>, vector<32x128xf32>, vector<2x128xf32> -> vector<2x128xf32>
    %c0_119 = arith.constant 0 : index
    %c0_120 = arith.constant 0 : index
    %c0_121 = arith.constant 0 : index
    %356 = vector.load %arg6[%c0_119, %c0_120, %c0_121] : memref<1x32x128xf32, #tpu.memory_space<vmem>>, vector<1x32x128xf32>
    %357 = vector.shape_cast %356 : vector<1x32x128xf32> to vector<32x128xf32>
    %cst_122 = arith.constant dense<0.000000e+00> : vector<2x128xf32>
    %358 = tpu.matmul %322, %357, %cst_122 {dimension_numbers = #tpu.dot_dimension_numbers<[1], [0], [0], [1], [0, 0, 1, 1], [], []>} : vector<2x32xf32>, vector<32x128xf32>, vector<2x128xf32> -> vector<2x128xf32>
    %359 = arith.addf %355, %358 : vector<2x128xf32>
    %360 = arith.addf %359, %11 : vector<2x128xf32>
    %361 = arith.negf %360 : vector<2x128xf32>
    %362 = math.exp %361 : vector<2x128xf32>
    %cst_123 = arith.constant 1.000000e+00 : f32
    %363 = vector.broadcast %cst_123 : f32 to vector<2x128xf32>
    %364 = arith.addf %363, %362 : vector<2x128xf32>
    %365 = arith.divf %363, %364 : vector<2x128xf32>
    %366 = math.tanh %360 : vector<2x128xf32>
    %367 = vector.extract_strided_slice %365 {offsets = [0, 0], sizes = [2, 32], strides = [1, 1]} : vector<2x128xf32> to vector<2x32xf32>
    %368 = vector.extract_strided_slice %365 {offsets = [0, 32], sizes = [2, 32], strides = [1, 1]} : vector<2x128xf32> to vector<2x32xf32>
    %369 = vector.extract_strided_slice %366 {offsets = [0, 64], sizes = [2, 32], strides = [1, 1]} : vector<2x128xf32> to vector<2x32xf32>
    %370 = vector.extract_strided_slice %365 {offsets = [0, 96], sizes = [2, 32], strides = [1, 1]} : vector<2x128xf32> to vector<2x32xf32>
    %371 = arith.mulf %368, %320 : vector<2x32xf32>
    %372 = arith.mulf %367, %369 : vector<2x32xf32>
    %373 = arith.addf %371, %372 : vector<2x32xf32>
    %374 = math.tanh %373 : vector<2x32xf32>
    %375 = arith.mulf %370, %374 : vector<2x32xf32>
    %c1_i32_124 = arith.constant 1 : i32
    %376 = arith.addi %c6_i32, %c1_i32_124 : i32
    %377 = vector.broadcast %376 : i32 to vector<2x1xi32>
    %378 = arith.cmpi eq, %7, %377 : vector<2x1xi32>
    %379 = arith.extui %378 : vector<2x1xi1> to vector<2x1xi32>
    %380 = arith.sitofp %379 : vector<2x1xi32> to vector<2x1xf32>
    %381 = vector.broadcast %380 : vector<2x1xf32> to vector<2x32xf32>
    %382 = arith.mulf %381, %375 : vector<2x32xf32>
    %383 = arith.addf %330, %382 : vector<2x32xf32>
    %c7_i32 = arith.constant 7 : i32
    %c2_i32_125 = arith.constant 2 : i32
    %384 = arith.muli %c7_i32, %c2_i32_125 : i32
    %385 = tpu.assume_multiple %384, 2 : i32
    %386 = arith.index_cast %385 : i32 to index
    %c0_126 = arith.constant 0 : index
    %387 = vector.load %arg11[%386, %c0_126] : memref<16x128xf32, #tpu.memory_space<vmem>>, vector<2x128xf32>
    %c0_127 = arith.constant 0 : index
    %c0_128 = arith.constant 0 : index
    %388 = vector.load %arg3[%c0_127, %c0_128] : memref<32x128xf32, #tpu.memory_space<vmem>>, vector<32x128xf32>
    %cst_129 = arith.constant dense<0.000000e+00> : vector<2x128xf32>
    %389 = tpu.matmul %352, %388, %cst_129 {dimension_numbers = #tpu.dot_dimension_numbers<[1], [0], [0], [1], [0, 0, 1, 1], [], []>} : vector<2x32xf32>, vector<32x128xf32>, vector<2x128xf32> -> vector<2x128xf32>
    %390 = arith.addf %387, %389 : vector<2x128xf32>
    %391 = arith.negf %390 : vector<2x128xf32>
    %392 = math.exp %391 : vector<2x128xf32>
    %cst_130 = arith.constant 1.000000e+00 : f32
    %393 = vector.broadcast %cst_130 : f32 to vector<2x128xf32>
    %394 = arith.addf %393, %392 : vector<2x128xf32>
    %395 = arith.divf %393, %394 : vector<2x128xf32>
    %396 = math.tanh %390 : vector<2x128xf32>
    %397 = vector.extract_strided_slice %395 {offsets = [0, 0], sizes = [2, 32], strides = [1, 1]} : vector<2x128xf32> to vector<2x32xf32>
    %398 = vector.extract_strided_slice %395 {offsets = [0, 32], sizes = [2, 32], strides = [1, 1]} : vector<2x128xf32> to vector<2x32xf32>
    %399 = vector.extract_strided_slice %396 {offsets = [0, 64], sizes = [2, 32], strides = [1, 1]} : vector<2x128xf32> to vector<2x32xf32>
    %400 = vector.extract_strided_slice %395 {offsets = [0, 96], sizes = [2, 32], strides = [1, 1]} : vector<2x128xf32> to vector<2x32xf32>
    %401 = arith.mulf %398, %350 : vector<2x32xf32>
    %402 = arith.mulf %397, %399 : vector<2x32xf32>
    %403 = arith.addf %401, %402 : vector<2x32xf32>
    %404 = math.tanh %403 : vector<2x32xf32>
    %405 = arith.mulf %400, %404 : vector<2x32xf32>
    %c0_131 = arith.constant 0 : index
    %c0_132 = arith.constant 0 : index
    %c0_133 = arith.constant 0 : index
    %406 = vector.load %arg5[%c0_131, %c0_132, %c0_133] : memref<1x32x128xf32, #tpu.memory_space<vmem>>, vector<1x32x128xf32>
    %407 = vector.shape_cast %406 : vector<1x32x128xf32> to vector<32x128xf32>
    %cst_134 = arith.constant dense<0.000000e+00> : vector<2x128xf32>
    %408 = tpu.matmul %405, %407, %cst_134 {dimension_numbers = #tpu.dot_dimension_numbers<[1], [0], [0], [1], [0, 0, 1, 1], [], []>} : vector<2x32xf32>, vector<32x128xf32>, vector<2x128xf32> -> vector<2x128xf32>
    %c0_135 = arith.constant 0 : index
    %c0_136 = arith.constant 0 : index
    %c0_137 = arith.constant 0 : index
    %409 = vector.load %arg6[%c0_135, %c0_136, %c0_137] : memref<1x32x128xf32, #tpu.memory_space<vmem>>, vector<1x32x128xf32>
    %410 = vector.shape_cast %409 : vector<1x32x128xf32> to vector<32x128xf32>
    %cst_138 = arith.constant dense<0.000000e+00> : vector<2x128xf32>
    %411 = tpu.matmul %375, %410, %cst_138 {dimension_numbers = #tpu.dot_dimension_numbers<[1], [0], [0], [1], [0, 0, 1, 1], [], []>} : vector<2x32xf32>, vector<32x128xf32>, vector<2x128xf32> -> vector<2x128xf32>
    %412 = arith.addf %408, %411 : vector<2x128xf32>
    %413 = arith.addf %412, %11 : vector<2x128xf32>
    %414 = arith.negf %413 : vector<2x128xf32>
    %415 = math.exp %414 : vector<2x128xf32>
    %cst_139 = arith.constant 1.000000e+00 : f32
    %416 = vector.broadcast %cst_139 : f32 to vector<2x128xf32>
    %417 = arith.addf %416, %415 : vector<2x128xf32>
    %418 = arith.divf %416, %417 : vector<2x128xf32>
    %419 = math.tanh %413 : vector<2x128xf32>
    %420 = vector.extract_strided_slice %418 {offsets = [0, 0], sizes = [2, 32], strides = [1, 1]} : vector<2x128xf32> to vector<2x32xf32>
    %421 = vector.extract_strided_slice %418 {offsets = [0, 32], sizes = [2, 32], strides = [1, 1]} : vector<2x128xf32> to vector<2x32xf32>
    %422 = vector.extract_strided_slice %419 {offsets = [0, 64], sizes = [2, 32], strides = [1, 1]} : vector<2x128xf32> to vector<2x32xf32>
    %423 = vector.extract_strided_slice %418 {offsets = [0, 96], sizes = [2, 32], strides = [1, 1]} : vector<2x128xf32> to vector<2x32xf32>
    %424 = arith.mulf %421, %373 : vector<2x32xf32>
    %425 = arith.mulf %420, %422 : vector<2x32xf32>
    %426 = arith.addf %424, %425 : vector<2x32xf32>
    %427 = math.tanh %426 : vector<2x32xf32>
    %428 = arith.mulf %423, %427 : vector<2x32xf32>
    %c1_i32_140 = arith.constant 1 : i32
    %429 = arith.addi %c7_i32, %c1_i32_140 : i32
    %430 = vector.broadcast %429 : i32 to vector<2x1xi32>
    %431 = arith.cmpi eq, %7, %430 : vector<2x1xi32>
    %432 = arith.extui %431 : vector<2x1xi1> to vector<2x1xi32>
    %433 = arith.sitofp %432 : vector<2x1xi32> to vector<2x1xf32>
    %434 = vector.broadcast %433 : vector<2x1xf32> to vector<2x32xf32>
    %435 = arith.mulf %434, %428 : vector<2x32xf32>
    %436 = arith.addf %383, %435 : vector<2x32xf32>
    %c8_i32 = arith.constant 8 : i32
    %c0_141 = arith.constant 0 : index
    %c0_142 = arith.constant 0 : index
    %437 = vector.load %arg8[%c0_141, %c0_142] : memref<1x32xf32, #tpu.memory_space<vmem>>, vector<1x32xf32>
    %438 = vector.broadcast %437 : vector<1x32xf32> to vector<2x32xf32>
    %439 = arith.mulf %436, %438 : vector<2x32xf32>
    %cst_143 = arith.constant dense<0.000000e+00> : vector<2xf32>
    %440 = vector.multi_reduction <add>, %439, %cst_143 [1] : vector<2x32xf32> to vector<2xf32>
    %441 = vector.shape_cast %440 : vector<2xf32> to vector<2x1xf32>
    %c0_144 = arith.constant 0 : index
    %c0_145 = arith.constant 0 : index
    %442 = vector.load %arg9[%c0_144, %c0_145] : memref<1x1xf32, #tpu.memory_space<vmem>>, vector<1x1xf32>
    %443 = vector.broadcast %442 : vector<1x1xf32> to vector<2x1xf32>
    %444 = arith.addf %441, %443 : vector<2x1xf32>
    %445 = arith.negf %444 : vector<2x1xf32>
    %446 = math.exp %445 : vector<2x1xf32>
    %cst_146 = arith.constant 1.000000e+00 : f32
    %447 = vector.broadcast %cst_146 : f32 to vector<2x1xf32>
    %448 = arith.addf %447, %446 : vector<2x1xf32>
    %449 = arith.divf %447, %448 : vector<2x1xf32>
    %c0_147 = arith.constant 0 : index
    %c0_148 = arith.constant 0 : index
    %450 = vector.load %arg10[%c0_147, %c0_148] : memref<2x1xf32, #tpu.memory_space<vmem>>, vector<2x1xf32>
    tpu.vector_store %arg10[%c0_147, %c0_148], %449 {strides = array<i32>} : memref<2x1xf32, #tpu.memory_space<vmem>>, vector<2x1xf32>,
    return
  }
}

</mosaic_0001>

<bundles_post_ra>
// kernel: tpu_custom_call.1
= control target key start
LH: loop header
LB: loop body
LE: loop exit
PB: predicated region body
PF: predicated region fallthrough
CT: control target
= control target key end

     0   :  { %s2250_s0 = inlined_call_operand.hbm [shape: f32[16,16], index: 0, kind: input, shape index: {}]   ;;  %s2251_s1 = inlined_call_operand.vmem [shape: s32[2,1], index: 1, kind: input, shape index: {}]   ;;  %s2252_s2 = inlined_call_operand.hbm [shape: f32[16,128], index: 2, kind: input, shape index: {}]   ;;  %s2253_s3 = inlined_call_operand.hbm [shape: f32[32,128], index: 3, kind: input, shape index: {}]   ;;  %s2254_s4 = inlined_call_operand.vmem [shape: f32[1,128], index: 4, kind: input, shape index: {}]   ;;  %s2255_s5 = inlined_call_operand.hbm [shape: f32[1,32,128], index: 5, kind: input, shape index: {}]   ;;  %s2256_s6 = inlined_call_operand.hbm [shape: f32[1,32,128], index: 6, kind: input, shape index: {}]   ;;  %s2257_s7 = inlined_call_operand.vmem [shape: f32[1,1,128], index: 7, kind: input, shape index: {}]   ;;  %s2258_s8 = inlined_call_operand.vmem [shape: f32[1,32], index: 8, kind: input, shape index: {}]   ;;  %s2259_s9 = inlined_call_operand.<no memory space> [shape: f32[1,1], index: 9, kind: input, shape index: {}]   ;;  %s2260_s10 = inlined_call_operand.vmem [shape: f32[2,1], index: 10, kind: output, shape index: {}]  }
   0x1   :  { %v15_v0 = vstv %s2259_s9 }
   0x2   :  { %16 = vst [vmem:[#allocation3] sm:$0x1] %v15_v0 }
   0x3   :  { %17 = vsyncpa [#allocation5], 0 }
   0x4   :  { %18 = vsyncpa [#allocation7], 0 }
   0x5   :  { %19 = vsyncpa [#allocation10], 0  ;;  %s39_s17 = sshll.u32 %s2252_s2, 4  ;;  %s1829_s18 = smov [#allocation6]   ;;  %s40_s17 = int_to_ptr.hbm [resolvable:$true] %s39_s17 }
   0x6   :  { %s41_s19 = sshll.u32 %s1829_s18, 4  ;;  %s67_s22 = sshll.u32 %s2255_s5, 4  ;;  %s42_s19 = int_to_ptr.vmem [resolvable:$true] %s41_s19  ;;  %s68_s22 = int_to_ptr.hbm [resolvable:$true] %s67_s22 }
   0x7   :  { %s1830_s23 = smov 128   ;;  %s1831_s24 = smov 8  }
   0x8   :  { %47 = dma.hbm_to_vmem [thread:$0]  %s40_s17, 256, %s42_s19, [#allocation7], %s1830_s23, %s1830_s23, %s1831_s24  }
   0x9   :  { %s1832_s9 = smov [#allocation9]   ;;  %s24_s28 = sshll.u32 %s2250_s0, 4  ;;  %s25_s28 = int_to_ptr.hbm [resolvable:$true] %s24_s28 }
   0xa   :  { %s69_s25 = sshll.u32 %s1832_s9, 4  ;;  %s52_s30 = sshll.u32 %s2253_s3, 4  ;;  %s70_s25 = int_to_ptr.vmem [resolvable:$true] %s69_s25  ;;  %s53_s30 = int_to_ptr.hbm [resolvable:$true] %s52_s30 }
   0xb   :  { %75 = dma.hbm_to_vmem [thread:$0]  %s68_s22, 512, %s70_s25, [#allocation10], %s1830_s23, %s1830_s23, %s1831_s24  }
   0xc   :  { %s1833_s11 = smov [#allocation4]   ;;  %s1834_s5 = smov [#allocation8]  }
   0xd   :  { %s26_s12 = sshll.u32 %s1833_s11, 4  ;;  %s54_s13 = sshll.u32 %s1834_s5, 4  ;;  %s27_s12 = int_to_ptr.vmem [resolvable:$true] %s26_s12  ;;  %s55_s13 = int_to_ptr.vmem [resolvable:$true] %s54_s13 }
   0xe   :  { %32 = dma.hbm_to_vmem [thread:$0]  %s25_s28, 256, %s27_s12, [#allocation5], %s1830_s23, %s1830_s23, %s1831_s24  }
   0xf   :  { %s80_s16 = sshll.u32 %s2256_s6, 4  ;;  %s1835_s0 = smov [#allocation11]   ;;  %s81_s16 = int_to_ptr.hbm [resolvable:$true] %s80_s16 }
  0x10   :  { %60 = dma.hbm_to_vmem [thread:$0]  %s53_s30, 512, %s55_s13, [#allocation7], %s1830_s23, %s1830_s23, %s1831_s24  }
  0x11   :  { %s82_s17 = sshll.u32 %s1835_s0, 4  ;;  %s83_s17 = int_to_ptr.vmem [resolvable:$true] %s82_s17 }
  0x12   :  { %88 = dma.hbm_to_vmem [thread:$0]  %s81_s16, 512, %s83_s17, [#allocation10], %s1830_s23, %s1830_s23, %s1831_s24  }
  0x13   :  { %1823 = dma.done.wait [#allocation5], 256  }
  0x14   :  { %1824 = vsyncadd [#allocation5], 4294967040 }
  0x15   :  { %1825 = dma.done.wait [#allocation7], 768  }
  0x16   :  { %1826 = vsyncadd [#allocation7], 4294966528 }
  0x17   :  { %1827 = dma.done.wait [#allocation10], 1024  }
  0x18   :  { %1828 = vsyncadd [#allocation10], 4294966272  ;;  %v118_v1 = vld [vmem:[#allocation6 + $0x8] sm:$0xff]  ;;  %v117_v2 = vld [vmem:[#allocation6] sm:$0xff]  ;;  %vm123_vm0 = vcmask 130048   ;;  %v1836_v8 = vmov 0.0  }
  0x19   :  { %144 = vmatpush.msra.mxu0 %v118_v1  ;;  %v115_v3 = vld [vmem:[#allocation4] sm:$0xff]  ;;  %v1914_v4 = vld [vmem:[#allocation8 + $0x18] sm:$0xff]  ;;  %v1916_v5 = vld [vmem:[#allocation8 + $0x10] sm:$0xff]  ;;  %s1837_s18 = smov 64   ;;  %vm165_vm5 = vcmask 261120   ;;  %s1840_s9 = smov 96  }
  0x1a   :  { %181 = vmatpush.msra.mxu1 %v1914_v4  ;;  %v1919_v6 = vld [vmem:[#allocation8 + $0x8] sm:$0xff]  ;;  %v1923_v7 = vld [vmem:[#allocation8] sm:$0xff]  ;;  %v1948_v35 = vld [vmem:[#allocation11 + $0x18] sm:$0xff] }
  0x1b   :  { %145 = vmatpush.msra.mxu0 %v117_v2  ;;  %v1939_v9 = vld [vmem:[%s2254_s4] ss:$0 sm:$0xff]  ;;  %s1838_s4 = smov 32   ;;  %v1950_v36 = vld [vmem:[#allocation9 + $0x18] sm:$0xff]  ;;  %v1952_v37 = vld [vmem:[#allocation11 + $0x10] sm:$0xff]  ;;  %247 = vmatpush.msra.mxu2 %v1948_v35 }
  0x1c   :  { %1482 = vmatmul.msk.f32.vlgmr.msra.gmra.mxu0 %vm123_vm0, %v115_v3  ;;  %182 = vmatpush.msra.mxu1 %v1916_v5  ;;  %v1956_v38 = vld [vmem:[#allocation9 + $0x10] sm:$0xff]  ;;  %v1958_v39 = vld [vmem:[#allocation11 + $0x8] sm:$0xff]  ;;  %v1966_v41 = vld [vmem:[#allocation11] sm:$0xff] }
  0x1d   :  { %500 = vmatpush.msrb.mxu0 %v1914_v4  ;;  %272 = vmatpush.msra.mxu3 %v1950_v36  ;;  %v1960_v40 = vld [vmem:[#allocation9 + $0x8] sm:$0xff]  ;;  %v1968_v42 = vld [vmem:[#allocation9] sm:$0xff] }
  0x1e   :  { %183 = vmatpush.msra.mxu1 %v1919_v6  ;;  %248 = vmatpush.msra.mxu2 %v1952_v37  ;;  %v2007_v47 = vld [vmem:[%s2257_s7] ss:$0 sm:$0xff] }
  0x1f   :  { %501 = vmatpush.msrb.mxu0 %v1916_v5  ;;  %273 = vmatpush.msra.mxu3 %v1956_v38 }
  0x20   :  { %184 = vmatpush.msra.mxu1 %v1923_v7  ;;  %249 = vmatpush.msra.mxu2 %v1958_v39 }
  0x21   :  { %185 = vmatmul.f32.vlgmr.msra.gmra.mxu1 %v1836_v8  ;;  %502 = vmatpush.msrb.mxu0 %v1919_v6 }
  0x22   :  { %342 = vmatpush.msrb.mxu1 %v1914_v4  ;;  %274 = vmatpush.msra.mxu3 %v1960_v40 }
  0x23   :  { %503 = vmatpush.msrb.mxu0 %v1923_v7  ;;  %250 = vmatpush.msra.mxu2 %v1966_v41 }
  0x24   :  { %343 = vmatpush.msrb.mxu1 %v1916_v5  ;;  %275 = vmatpush.msra.mxu3 %v1968_v42 }
  0x25   :  { %721 = vmatpush.msra.mxu0 %v1948_v35  ;;  %251 = vmatmul.f32.vlgmr.msra.gmra.mxu2 %v1836_v8 }
  0x26   :  { %344 = vmatpush.msrb.mxu1 %v1919_v6  ;;  %430 = vmatpush.msrb.mxu3 %v1950_v36 }
  0x27   :  { %722 = vmatpush.msra.mxu0 %v1952_v37  ;;  %405 = vmatpush.msrb.mxu2 %v1948_v35 }
  0x28   :  { %345 = vmatpush.msrb.mxu1 %v1923_v7  ;;  %431 = vmatpush.msrb.mxu3 %v1956_v38 }
  0x29   :  { %723 = vmatpush.msra.mxu0 %v1958_v39  ;;  %406 = vmatpush.msrb.mxu2 %v1952_v37 }
  0x2a   :  { %563 = vmatpush.msra.mxu1 %v1948_v35  ;;  %432 = vmatpush.msrb.mxu3 %v1960_v40 }
  0x2b   :  { %724 = vmatpush.msra.mxu0 %v1966_v41  ;;  %407 = vmatpush.msrb.mxu2 %v1958_v39 }
  0x2c   :  { %564 = vmatpush.msra.mxu1 %v1952_v37  ;;  %433 = vmatpush.msrb.mxu3 %v1968_v42 }
  0x2d   :  { %408 = vmatpush.msrb.mxu2 %v1966_v41 }
  0x2e   :  { %565 = vmatpush.msra.mxu1 %v1958_v39 }
  0x2f   :  { %588 = vmatpush.msra.mxu2 %v1950_v36 }
  0x30   :  { %566 = vmatpush.msra.mxu1 %v1966_v41 }
  0x31   :  { %589 = vmatpush.msra.mxu2 %v1956_v38 }
  0x33   :  { %590 = vmatpush.msra.mxu2 %v1960_v40 }
  0x35   :  { %591 = vmatpush.msra.mxu2 %v1968_v42 }
  0x99   :  { %v147_v10 = vpop.f32.mrf.mxu0 }
  0x9a   :  { %v148_v11 = vadd.f32 %v1939_v9, %v147_v10 }
  0x9c   :  { %153 = vst [vmem:[#allocation2] sm:$0xff] %v148_v11 }
  0x9e   :  { %v186_v12 = vpop.f32.mrf.mxu1 }
  0xa3   :  { %v160_v13 = vld [vmem:[#allocation2] sm:$0x3]  ;;  %v329_v52 = vld [vmem:[#allocation2 + $0x2] sm:$0x3] }
  0xa4   :  { %v189_v14 = vadd.f32 %v186_v12, %v160_v13 }
  0xa6   :  { %1570 = vtanh.f32 %v189_v14  ;;  %v1484_v16 = vmul.f32 -1.442695, %v189_v14 }
  0xa8   :  { %1572 = vpow2.f32 %v1484_v16  ;;  %v252_v46 = vpop.f32.mrf.mxu2 }
  0xac   :  { %v1571_v15 = vpop.eup %1570 }
  0xad   :  { %212 = vrot.lane.b32.xlu0 %v1571_v15, %s1837_s18 }
  0xae   :  { %v1573_v17 = vpop.eup %1572 }
  0xaf   :  { %v193_v18 = vadd.f32 1.0, %v1573_v17 }
  0xb1   :  { %1574 = vrcp.f32 %v193_v18  ;;  %v205_v24 = vand.u32 2147483648, %v193_v18  ;;  %vm199_vm2 = vweird.f32 %v193_v18  ;;  %v203_v25 = vand.u32 2147483647, %v193_v18 }
  0xb3   :  { %v206_v27 = vor.u32 1.1754944e-38, %v205_v24  ;;  %vm204_vm4 = vcmp.eq.f32.partialorder %v203_v25, 8.507059e+37 }
  0xb7   :  { %v1575_v19 = vpop.eup %1574 }
  0xb8   :  { %v195_v20 = vmul.f32 %v1575_v19, %v193_v18  ;;  %vm200_vm1 = vweird.f32 %v1575_v19 }
  0xb9   :  { %vm201_vm3 = vmor %vm199_vm2, %vm200_vm1 }
  0xba   :  { %v196_v21 = vsub.f32 1.0, %v195_v20 }
  0xbc   :  { %v197_v22 = vmul.f32 %v1575_v19, %v196_v21 }
  0xbe   :  { %v198_v23 = vadd.f32 %v1575_v19, %v197_v22 }
  0xc0   :  { %v202_v26 = vsel %vm201_vm3, %v1575_v19, %v198_v23 }
  0xc1   :  { %v207_v29 = vsel %vm204_vm4, %v206_v27, %v202_v26 }
  0xc2   :  { %v210_v31 = vmul.f32 0.0, %v207_v29 }
 0x11f   :  { %v213_v28 = vpop.permute.xlu0 %212 }
 0x120   :  { %v215_v30 = vmul.f32 %v213_v28, %v207_v29 }
 0x122   :  { %217 = vrot.lane.b32.xlu0 %v215_v30, %s1838_s4 }
 0x194   :  { %v218_v32 = vpop.permute.xlu0 %217 }
 0x195   :  { %v1944_v33 = vadd.f32 %v218_v32, %v210_v31 }
 0x197   :  { %1576 = vtanh.f32 %v1944_v33 }
 0x19d   :  { %v1577_v34 = vpop.eup %1576 }
 0x19e   :  { %223 = vrot.lane.b32.xlu1 %v1577_v34, %s1837_s18 }
 0x210   :  { %v224_v43 = vpop.permute.xlu1 %223 }
 0x211   :  { %v226_v44 = vmul.f32 %v224_v43, %v207_v29 }
 0x213   :  { %256 = vrot.lane.b32.xlu1 %v226_v44, %s1838_s4 }
 0x285   :  { %v257_v45 = vpop.permute.xlu1 %256 }
 0x286   :  { %1485 = vmatmul.msk.f32.vlgmr.msra.gmra.mxu3 %vm165_vm5, %v257_v45  ;;  %1488 = vmatmul.msk.f32.vlgmr.msrb.gmra.mxu1 %vm165_vm5, %v257_v45 }
 0x287   :  { %658 = vmatpush.msra.mxu3 %v1914_v4  ;;  %746 = vmatpush.msrb.mxu1 %v1950_v36 }
 0x289   :  { %659 = vmatpush.msra.mxu3 %v1916_v5  ;;  %747 = vmatpush.msrb.mxu1 %v1956_v38 }
 0x28b   :  { %660 = vmatpush.msra.mxu3 %v1919_v6  ;;  %748 = vmatpush.msrb.mxu1 %v1960_v40 }
 0x28d   :  { %661 = vmatpush.msra.mxu3 %v1923_v7  ;;  %749 = vmatpush.msrb.mxu1 %v1968_v42 }
 0x303   :  { %v347_v51 = vpop.f32.mrf.mxu1 }
 0x304   :  { %v350_v53 = vadd.f32 %v347_v51, %v329_v52 }
 0x306   :  { %v1489_v57 = vmul.f32 -1.442695, %v350_v53 }
 0x309   :  { %v277_v48 = vpop.f32.mrf.mxu3 }
 0x30a   :  { %v278_v49 = vadd.f32 %v277_v48, %v252_v46 }
 0x30c   :  { %v280_v50 = vadd.f32 %v2007_v47, %v278_v49 }
 0x30e   :  { %1578 = vtanh.f32 %v280_v50  ;;  %v1486_v56 = vmul.f32 -1.442695, %v280_v50 }
 0x30f   :  { %1580 = vtanh.f32 %v350_v53 }
 0x310   :  { %1582 = vpow2.f32 %v1486_v56 }
 0x311   :  { %1584 = vpow2.f32 %v1489_v57 }
 0x314   :  { %v1579_v54 = vpop.eup %1578 }
 0x315   :  { %303 = vrot.lane.b32.xlu2 %v1579_v54, %s1837_s18  ;;  %v1581_v55 = vpop.eup %1580  ;;  %v487_v54 = vld [vmem:[#allocation2 + $0x4] sm:$0x3] }
 0x316   :  { %v1583_v58 = vpop.eup %1582 }
 0x317   :  { %v284_v59 = vadd.f32 1.0, %v1583_v58  ;;  %v1585_v60 = vpop.eup %1584 }
 0x318   :  { %v354_v61 = vadd.f32 1.0, %v1585_v60 }
 0x319   :  { %1586 = vrcp.f32 %v284_v59  ;;  %v296_v12 = vand.u32 2147483648, %v284_v59  ;;  %vm290_vm7 = vweird.f32 %v284_v59  ;;  %v294_v13 = vand.u32 2147483647, %v284_v59 }
 0x31a   :  { %1588 = vrcp.f32 %v354_v61  ;;  %v366_v21 = vand.u32 2147483648, %v354_v61  ;;  %vm360_vm11 = vweird.f32 %v354_v61  ;;  %v364_v22 = vand.u32 2147483647, %v354_v61 }
 0x31b   :  { %v297_v16 = vor.u32 1.1754944e-38, %v296_v12  ;;  %vm295_vm9 = vcmp.eq.f32.partialorder %v294_v13, 8.507059e+37 }
 0x31c   :  { %v367_v24 = vor.u32 1.1754944e-38, %v366_v21  ;;  %vm365_vm13 = vcmp.eq.f32.partialorder %v364_v22, 8.507059e+37 }
 0x31d   :  { %373 = vrot.lane.b32.xlu2 %v1581_v55, %s1837_s18 }
 0x31f   :  { %v1587_v62 = vpop.eup %1586 }
 0x320   :  { %v286_v63 = vmul.f32 %v1587_v62, %v284_v59  ;;  %v1589_v1 = vpop.eup %1588  ;;  %vm291_vm6 = vweird.f32 %v1587_v62 }
 0x321   :  { %v356_v3 = vmul.f32 %v1589_v1, %v354_v61  ;;  %vm292_vm8 = vmor %vm290_vm7, %vm291_vm6  ;;  %vm361_vm10 = vweird.f32 %v1589_v1 }
 0x322   :  { %v287_v0 = vsub.f32 1.0, %v286_v63  ;;  %vm362_vm12 = vmor %vm360_vm11, %vm361_vm10 }
 0x323   :  { %v357_v11 = vsub.f32 1.0, %v356_v3 }
 0x324   :  { %v288_v2 = vmul.f32 %v1587_v62, %v287_v0 }
 0x325   :  { %v358_v15 = vmul.f32 %v1589_v1, %v357_v11 }
 0x326   :  { %v289_v10 = vadd.f32 %v1587_v62, %v288_v2 }
 0x327   :  { %v359_v20 = vadd.f32 %v1589_v1, %v358_v15 }
 0x328   :  { %v293_v14 = vsel %vm292_vm8, %v1587_v62, %v289_v10 }
 0x329   :  { %v298_v18 = vsel %vm295_vm9, %v297_v16, %v293_v14  ;;  %v363_v23 = vsel %vm362_vm12, %v1589_v1, %v359_v20 }
 0x32a   :  { %v368_v25 = vsel %vm365_vm13, %v367_v24, %v363_v23  ;;  %v301_v28 = vmul.f32 0.0, %v298_v18 }
 0x32b   :  { %v371_v31 = vmul.f32 %v368_v25, %v1944_v33  ;;  %v116_v33 = vld [vmem:[#allocation4 + $0x8] sm:$0xff] }
 0x32c   :  { %1483 = vmatmul.msk.f32.gmra.mxu0 %vm123_vm0, %v116_v33 }
 0x36f   :  { %v304_v17 = vpop.permute.xlu2 %303 }
 0x370   :  { %v306_v19 = vmul.f32 %v304_v17, %v298_v18 }
 0x372   :  { %308 = vrot.lane.b32.xlu0 %v306_v19, %s1838_s4 }
 0x377   :  { %v374_v26 = vpop.permute.xlu2 %373 }
 0x378   :  { %v376_v27 = vmul.f32 %v374_v26, %v368_v25 }
 0x37a   :  { %378 = vrot.lane.b32.xlu1 %v376_v27, %s1838_s4 }
 0x3a9   :  { %v150_v52 = vpop.f32.mrf.mxu0 }
 0x3aa   :  { %v151_v53 = vadd.f32 %v1939_v9, %v150_v52 }
 0x3ac   :  { %154 = vst [vmem:[#allocation2 + $0x8] sm:$0xff] %v151_v53 }
 0x3e4   :  { %v309_v29 = vpop.permute.xlu0 %308 }
 0x3e5   :  { %v2014_v30 = vadd.f32 %v309_v29, %v301_v28 }
 0x3e7   :  { %1590 = vtanh.f32 %v2014_v30 }
 0x3ec   :  { %v379_v32 = vpop.permute.xlu1 %378 }
 0x3ed   :  { %v1591_v34 = vpop.eup %1590  ;;  %v2018_v43 = vadd.f32 %v379_v32, %v371_v31 }
 0x3ee   :  { %314 = vrot.lane.b32.xlu2 %v1591_v34, %s1837_s18 }
 0x3ef   :  { %1592 = vtanh.f32 %v2018_v43 }
 0x3f5   :  { %v1593_v44 = vpop.eup %1592 }
 0x3f6   :  { %384 = vrot.lane.b32.xlu0 %v1593_v44, %s1837_s18 }
 0x448   :  { %v315_v45 = vpop.permute.xlu2 %314 }
 0x449   :  { %v2023_v46 = vmul.f32 %v315_v45, %v298_v18 }
 0x44b   :  { %389 = vrot.lane.b32.xlu1 %v2023_v46, %s1838_s4 }
 0x468   :  { %v385_v48 = vpop.permute.xlu0 %384 }
 0x469   :  { %v387_v49 = vmul.f32 %v385_v48, %v368_v25 }
 0x46b   :  { %414 = vrot.lane.b32.xlu2 %v387_v49, %s1838_s4 }
 0x4bd   :  { %v390_v50 = vpop.permute.xlu1 %389 }
 0x4be   :  { %1490 = vmatmul.msk.f32.vlgmr.msrb.gmra.mxu2 %vm165_vm5, %v390_v50 }
 0x4bf   :  { %816 = vmatpush.msrb.mxu2 %v1914_v4 }
 0x4c1   :  { %817 = vmatpush.msrb.mxu2 %v1916_v5 }
 0x4c3   :  { %818 = vmatpush.msrb.mxu2 %v1919_v6 }
 0x4c5   :  { %v415_v51 = vpop.permute.xlu2 %414  ;;  %819 = vmatpush.msrb.mxu2 %v1923_v7 }
 0x4c6   :  { %1491 = vmatmul.msk.f32.vlgmr.msrb.gmra.mxu3 %vm165_vm5, %v415_v51  ;;  %1494 = vmatmul.msk.f32.vlgmr.msrb.gmra.mxu0 %vm165_vm5, %v415_v51 }
 0x4c7   :  { %904 = vmatpush.msrb.mxu0 %v1950_v36  ;;  %879 = vmatpush.msrb.mxu3 %v1948_v35 }
 0x4c9   :  { %905 = vmatpush.msrb.mxu0 %v1956_v38  ;;  %880 = vmatpush.msrb.mxu3 %v1952_v37 }
 0x4cb   :  { %906 = vmatpush.msrb.mxu0 %v1960_v40  ;;  %881 = vmatpush.msrb.mxu3 %v1958_v39 }
 0x4cd   :  { %907 = vmatpush.msrb.mxu0 %v1968_v42  ;;  %882 = vmatpush.msrb.mxu3 %v1966_v41 }
 0x541   :  { %v410_v57 = vpop.f32.mrf.mxu2 }
 0x543   :  { %v505_v55 = vpop.f32.mrf.mxu0 }
 0x544   :  { %v508_v56 = vadd.f32 %v505_v55, %v487_v54 }
 0x546   :  { %1594 = vtanh.f32 %v508_v56  ;;  %v1495_v63 = vmul.f32 -1.442695, %v508_v56 }
 0x549   :  { %v435_v58 = vpop.f32.mrf.mxu3 }
 0x54a   :  { %v436_v59 = vadd.f32 %v435_v58, %v410_v57  ;;  %v645_v58 = vld [vmem:[#allocation2 + $0x6] sm:$0x3] }
 0x54c   :  { %v1595_v60 = vpop.eup %1594  ;;  %v438_v61 = vadd.f32 %v2007_v47, %v436_v59 }
 0x54d   :  { %531 = vrot.lane.b32.xlu0 %v1595_v60, %s1837_s18 }
 0x54e   :  { %1596 = vtanh.f32 %v438_v61  ;;  %v1492_v9 = vmul.f32 -1.442695, %v438_v61 }
 0x54f   :  { %1598 = vpow2.f32 %v1495_v63 }
 0x550   :  { %1600 = vpow2.f32 %v1492_v9 }
 0x554   :  { %v1597_v62 = vpop.eup %1596 }
 0x555   :  { %461 = vrot.lane.b32.xlu1 %v1597_v62, %s1837_s18  ;;  %v1599_v0 = vpop.eup %1598 }
 0x556   :  { %v512_v1 = vadd.f32 1.0, %v1599_v0  ;;  %v1601_v2 = vpop.eup %1600 }
 0x557   :  { %v442_v3 = vadd.f32 1.0, %v1601_v2 }
 0x558   :  { %1602 = vrcp.f32 %v512_v1  ;;  %v524_v18 = vand.u32 2147483648, %v512_v1  ;;  %vm518_vm15 = vweird.f32 %v512_v1  ;;  %v522_v19 = vand.u32 2147483647, %v512_v1 }
 0x559   :  { %1604 = vrcp.f32 %v442_v3  ;;  %v454_v27 = vand.u32 2147483648, %v442_v3  ;;  %vm448_vm3 = vweird.f32 %v442_v3  ;;  %v452_v28 = vand.u32 2147483647, %v442_v3 }
 0x55a   :  { %v525_v22 = vor.u32 1.1754944e-38, %v524_v18  ;;  %vm523_vm1 = vcmp.eq.f32.partialorder %v522_v19, 8.507059e+37 }
 0x55b   :  { %v455_v31 = vor.u32 1.1754944e-38, %v454_v27  ;;  %vm453_vm6 = vcmp.eq.f32.partialorder %v452_v28, 8.507059e+37 }
 0x55e   :  { %v1603_v10 = vpop.eup %1602 }
 0x55f   :  { %v514_v11 = vmul.f32 %v1603_v10, %v512_v1  ;;  %v1605_v13 = vpop.eup %1604  ;;  %vm519_vm14 = vweird.f32 %v1603_v10 }
 0x560   :  { %v444_v15 = vmul.f32 %v1605_v13, %v442_v3  ;;  %vm520_vm0 = vmor %vm518_vm15, %vm519_vm14  ;;  %vm449_vm2 = vweird.f32 %v1605_v13 }
 0x561   :  { %v515_v12 = vsub.f32 1.0, %v514_v11  ;;  %vm450_vm4 = vmor %vm448_vm3, %vm449_vm2 }
 0x562   :  { %v445_v17 = vsub.f32 1.0, %v444_v15 }
 0x563   :  { %v516_v14 = vmul.f32 %v1603_v10, %v515_v12 }
 0x564   :  { %v446_v21 = vmul.f32 %v1605_v13, %v445_v17 }
 0x565   :  { %v517_v16 = vadd.f32 %v1603_v10, %v516_v14 }
 0x566   :  { %v447_v26 = vadd.f32 %v1605_v13, %v446_v21 }
 0x567   :  { %v521_v20 = vsel %vm520_vm0, %v1603_v10, %v517_v16 }
 0x568   :  { %v526_v24 = vsel %vm523_vm1, %v525_v22, %v521_v20  ;;  %v451_v29 = vsel %vm450_vm4, %v1605_v13, %v447_v26 }
 0x569   :  { %v456_v34 = vsel %vm453_vm6, %v455_v31, %v451_v29  ;;  %v529_v45 = vmul.f32 %v526_v24, %v2018_v43 }
 0x56a   :  { %v459_v50 = vmul.f32 %v456_v34, %v2014_v30 }
 0x5bf   :  { %v532_v23 = vpop.permute.xlu0 %531 }
 0x5c0   :  { %v534_v25 = vmul.f32 %v532_v23, %v526_v24 }
 0x5c2   :  { %536 = vrot.lane.b32.xlu2 %v534_v25, %s1838_s4 }
 0x5c7   :  { %v462_v32 = vpop.permute.xlu1 %461 }
 0x5c8   :  { %v464_v44 = vmul.f32 %v462_v32, %v456_v34 }
 0x5ca   :  { %466 = vrot.lane.b32.xlu0 %v464_v44, %s1838_s4 }
 0x61c   :  { %v537_v48 = vpop.permute.xlu2 %536 }
 0x61d   :  { %v2051_v49 = vadd.f32 %v537_v48, %v529_v45 }
 0x61f   :  { %1606 = vtanh.f32 %v2051_v49 }
 0x625   :  { %v1607_v33 = vpop.eup %1606 }
 0x626   :  { %542 = vrot.lane.b32.xlu1 %v1607_v33, %s1837_s18 }
 0x63c   :  { %v467_v51 = vpop.permute.xlu0 %466 }
 0x63d   :  { %v2056_v52 = vadd.f32 %v467_v51, %v459_v50 }
 0x63f   :  { %1608 = vtanh.f32 %v2056_v52 }
 0x645   :  { %v1609_v53 = vpop.eup %1608 }
 0x646   :  { %472 = vrot.lane.b32.xlu2 %v1609_v53, %s1837_s18 }
 0x698   :  { %v543_v54 = vpop.permute.xlu1 %542 }
 0x699   :  { %v545_v43 = vmul.f32 %v543_v54, %v526_v24 }
 0x69b   :  { %572 = vrot.lane.b32.xlu0 %v545_v43, %s1838_s4 }
 0x6a0   :  { %v473_v55 = vpop.permute.xlu2 %472 }
 0x6a1   :  { %v2061_v56 = vmul.f32 %v473_v55, %v456_v34 }
 0x6a3   :  { %547 = vrot.lane.b32.xlu1 %v2061_v56, %s1838_s4 }
 0x70d   :  { %v573_v57 = vpop.permute.xlu0 %572 }
 0x70e   :  { %1497 = vmatmul.msk.f32.vlgmr.msra.gmra.mxu2 %vm165_vm5, %v573_v57  ;;  %1500 = vmatmul.msk.f32.vlgmr.msra.gmra.mxu3 %vm165_vm5, %v573_v57 }
 0x70f   :  { %1062 = vmatpush.msra.mxu3 %v1950_v36  ;;  %1037 = vmatpush.msra.mxu2 %v1948_v35 }
 0x711   :  { %1063 = vmatpush.msra.mxu3 %v1956_v38  ;;  %1038 = vmatpush.msra.mxu2 %v1952_v37 }
 0x713   :  { %1064 = vmatpush.msra.mxu3 %v1960_v40  ;;  %1039 = vmatpush.msra.mxu2 %v1958_v39 }
 0x715   :  { %v548_v30 = vpop.permute.xlu1 %547  ;;  %1065 = vmatpush.msra.mxu3 %v1968_v42  ;;  %1040 = vmatpush.msra.mxu2 %v1966_v41 }
 0x716   :  { %1496 = vmatmul.msk.f32.vlgmr.msra.gmra.mxu1 %vm165_vm5, %v548_v30 }
 0x717   :  { %974 = vmatpush.msra.mxu1 %v1914_v4 }
 0x719   :  { %975 = vmatpush.msra.mxu1 %v1916_v5 }
 0x71b   :  { %976 = vmatpush.msra.mxu1 %v1919_v6 }
 0x71d   :  { %977 = vmatpush.msra.mxu1 %v1923_v7 }
 0x791   :  { %v663_v59 = vpop.f32.mrf.mxu3  ;;  %v593_v61 = vpop.f32.mrf.mxu2 }
 0x792   :  { %v666_v60 = vadd.f32 %v663_v59, %v645_v58 }
 0x793   :  { %v568_v62 = vpop.f32.mrf.mxu1 }
 0x794   :  { %1610 = vtanh.f32 %v666_v60  ;;  %v594_v63 = vadd.f32 %v593_v61, %v568_v62  ;;  %v1501_v11 = vmul.f32 -1.442695, %v666_v60 }
 0x796   :  { %v596_v9 = vadd.f32 %v2007_v47, %v594_v63 }
 0x798   :  { %1612 = vtanh.f32 %v596_v9  ;;  %v1498_v2 = vmul.f32 -1.442695, %v596_v9 }
 0x79a   :  { %v1611_v0 = vpop.eup %1610  ;;  %1614 = vpow2.f32 %v1498_v2  ;;  %v803_v2 = vld [vmem:[#allocation2 + $0x8] sm:$0x3] }
 0x79b   :  { %689 = vrot.lane.b32.xlu0 %v1611_v0, %s1837_s18 }
 0x79e   :  { %v1613_v1 = vpop.eup %1612 }
 0x79f   :  { %619 = vrot.lane.b32.xlu2 %v1613_v1, %s1837_s18 }
 0x7a0   :  { %v1615_v3 = vpop.eup %1614 }
 0x7a1   :  { %v600_v10 = vadd.f32 1.0, %v1615_v3 }
 0x7a3   :  { %1616 = vrcp.f32 %v600_v10  ;;  %v612_v19 = vand.u32 2147483648, %v600_v10  ;;  %vm606_vm8 = vweird.f32 %v600_v10  ;;  %v610_v20 = vand.u32 2147483647, %v600_v10 }
 0x7a4   :  { %1618 = vpow2.f32 %v1501_v11 }
 0x7a5   :  { %v613_v23 = vor.u32 1.1754944e-38, %v612_v19  ;;  %vm611_vm10 = vcmp.eq.f32.partialorder %v610_v20, 8.507059e+37 }
 0x7a9   :  { %v1617_v12 = vpop.eup %1616 }
 0x7aa   :  { %v602_v13 = vmul.f32 %v1617_v12, %v600_v10  ;;  %v1619_v14 = vpop.eup %1618  ;;  %vm607_vm7 = vweird.f32 %v1617_v12 }
 0x7ab   :  { %v670_v16 = vadd.f32 1.0, %v1619_v14  ;;  %vm608_vm9 = vmor %vm606_vm8, %vm607_vm7 }
 0x7ac   :  { %v603_v15 = vsub.f32 1.0, %v602_v13 }
 0x7ad   :  { %1620 = vrcp.f32 %v670_v16  ;;  %v682_v32 = vand.u32 2147483648, %v670_v16  ;;  %vm676_vm12 = vweird.f32 %v670_v16  ;;  %v680_v34 = vand.u32 2147483647, %v670_v16 }
 0x7ae   :  { %v604_v17 = vmul.f32 %v1617_v12, %v603_v15 }
 0x7af   :  { %v683_v45 = vor.u32 1.1754944e-38, %v682_v32  ;;  %vm681_vm14 = vcmp.eq.f32.partialorder %v680_v34, 8.507059e+37 }
 0x7b0   :  { %v605_v18 = vadd.f32 %v1617_v12, %v604_v17 }
 0x7b2   :  { %v609_v21 = vsel %vm608_vm9, %v1617_v12, %v605_v18 }
 0x7b3   :  { %v1621_v22 = vpop.eup %1620  ;;  %v614_v25 = vsel %vm611_vm10, %v613_v23, %v609_v21 }
 0x7b4   :  { %v672_v27 = vmul.f32 %v1621_v22, %v670_v16  ;;  %vm677_vm11 = vweird.f32 %v1621_v22  ;;  %v617_v43 = vmul.f32 %v614_v25, %v2056_v52 }
 0x7b5   :  { %vm678_vm13 = vmor %vm676_vm12, %vm677_vm11 }
 0x7b6   :  { %v673_v28 = vsub.f32 1.0, %v672_v27 }
 0x7b8   :  { %v674_v29 = vmul.f32 %v1621_v22, %v673_v28 }
 0x7ba   :  { %v675_v31 = vadd.f32 %v1621_v22, %v674_v29 }
 0x7bc   :  { %v679_v44 = vsel %vm678_vm13, %v1621_v22, %v675_v31 }
 0x7bd   :  { %v684_v33 = vsel %vm681_vm14, %v683_v45, %v679_v44 }
 0x7be   :  { %v687_v51 = vmul.f32 %v684_v33, %v2051_v49 }
 0x7f9   :  { %v620_v24 = vpop.permute.xlu2 %619 }
 0x7fa   :  { %v622_v26 = vmul.f32 %v620_v24, %v614_v25 }
 0x7fc   :  { %624 = vrot.lane.b32.xlu1 %v622_v26, %s1838_s4 }
 0x80d   :  { %v690_v48 = vpop.permute.xlu0 %689 }
 0x80e   :  { %v692_v50 = vmul.f32 %v690_v48, %v684_v33 }
 0x810   :  { %694 = vrot.lane.b32.xlu2 %v692_v50, %s1838_s4 }
 0x86a   :  { %v695_v53 = vpop.permute.xlu2 %694 }
 0x86b   :  { %v2086_v54 = vadd.f32 %v695_v53, %v687_v51 }
 0x86d   :  { %1622 = vtanh.f32 %v2086_v54 }
 0x86e   :  { %v625_v55 = vpop.permute.xlu1 %624 }
 0x86f   :  { %v2090_v57 = vadd.f32 %v625_v55, %v617_v43 }
 0x871   :  { %1624 = vtanh.f32 %v2090_v57 }
 0x873   :  { %v1623_v30 = vpop.eup %1622 }
 0x874   :  { %700 = vrot.lane.b32.xlu1 %v1623_v30, %s1837_s18 }
 0x877   :  { %v1625_v58 = vpop.eup %1624 }
 0x878   :  { %630 = vrot.lane.b32.xlu0 %v1625_v58, %s1837_s18 }
 0x8e6   :  { %v701_v59 = vpop.permute.xlu1 %700 }
 0x8e7   :  { %v703_v49 = vmul.f32 %v701_v59, %v684_v33 }
 0x8e9   :  { %730 = vrot.lane.b32.xlu0 %v703_v49, %s1838_s4 }
 0x8ea   :  { %v631_v60 = vpop.permute.xlu0 %630 }
 0x8eb   :  { %v2096_v61 = vmul.f32 %v631_v60, %v614_v25 }
 0x8ed   :  { %705 = vrot.lane.b32.xlu2 %v2096_v61, %s1838_s4 }
 0x947   :  { %v706_v52 = vpop.permute.xlu2 %705 }
 0x948   :  { %1502 = vmatmul.msk.f32.vlgmr.msra.gmra.mxu0 %vm165_vm5, %v706_v52 }
 0x949   :  { %1132 = vmatpush.msra.mxu0 %v1914_v4 }
 0x94b   :  { %1133 = vmatpush.msra.mxu0 %v1916_v5 }
 0x94d   :  { %1134 = vmatpush.msra.mxu0 %v1919_v6 }
 0x94f   :  { %1135 = vmatpush.msra.mxu0 %v1923_v7 }
 0x95b   :  { %v731_v62 = vpop.permute.xlu0 %730 }
 0x95c   :  { %1503 = vmatmul.msk.f32.vlgmr.msrb.gmra.mxu1 %vm165_vm5, %v731_v62  ;;  %1506 = vmatmul.msk.f32.vlgmr.msrb.gmra.mxu2 %vm165_vm5, %v731_v62 }
 0x95d   :  { %1220 = vmatpush.msrb.mxu2 %v1950_v36  ;;  %1195 = vmatpush.msrb.mxu1 %v1948_v35 }
 0x95f   :  { %1221 = vmatpush.msrb.mxu2 %v1956_v38  ;;  %1196 = vmatpush.msrb.mxu1 %v1952_v37 }
 0x961   :  { %1222 = vmatpush.msrb.mxu2 %v1960_v40  ;;  %1197 = vmatpush.msrb.mxu1 %v1958_v39 }
 0x963   :  { %1223 = vmatpush.msrb.mxu2 %v1968_v42  ;;  %1198 = vmatpush.msrb.mxu1 %v1966_v41 }
 0x9c5   :  { %v726_v63 = vpop.f32.mrf.mxu0 }
 0x9d9   :  { %v751_v9 = vpop.f32.mrf.mxu1 }
 0x9da   :  { %v752_v0 = vadd.f32 %v751_v9, %v726_v63 }
 0x9dc   :  { %v754_v1 = vadd.f32 %v2007_v47, %v752_v0 }
 0x9de   :  { %1626 = vtanh.f32 %v754_v1  ;;  %v1504_v16 = vmul.f32 -1.442695, %v754_v1 }
 0x9df   :  { %v821_v3 = vpop.f32.mrf.mxu2 }
 0x9e0   :  { %v824_v10 = vadd.f32 %v821_v3, %v803_v2 }
 0x9e2   :  { %1628 = vtanh.f32 %v824_v10  ;;  %v1507_v13 = vmul.f32 -1.442695, %v824_v10 }
 0x9e4   :  { %v1627_v11 = vpop.eup %1626  ;;  %1630 = vpow2.f32 %v1507_v13 }
 0x9e5   :  { %777 = vrot.lane.b32.xlu1 %v1627_v11, %s1837_s18 }
 0x9e8   :  { %v1629_v12 = vpop.eup %1628 }
 0x9e9   :  { %847 = vrot.lane.b32.xlu2 %v1629_v12, %s1837_s18 }
 0x9ea   :  { %v1631_v14 = vpop.eup %1630 }
 0x9eb   :  { %v828_v15 = vadd.f32 1.0, %v1631_v14 }
 0x9ed   :  { %1632 = vrcp.f32 %v828_v15  ;;  %v840_v24 = vand.u32 2147483648, %v828_v15  ;;  %vm834_vm0 = vweird.f32 %v828_v15  ;;  %v838_v25 = vand.u32 2147483647, %v828_v15 }
 0x9ee   :  { %1634 = vpow2.f32 %v1504_v16 }
 0x9ef   :  { %v841_v28 = vor.u32 1.1754944e-38, %v840_v24  ;;  %vm839_vm2 = vcmp.eq.f32.partialorder %v838_v25, 8.507059e+37 }
 0x9f3   :  { %v1633_v17 = vpop.eup %1632 }
 0x9f4   :  { %v830_v18 = vmul.f32 %v1633_v17, %v828_v15  ;;  %v1635_v19 = vpop.eup %1634  ;;  %vm835_vm15 = vweird.f32 %v1633_v17 }
 0x9f5   :  { %v758_v21 = vadd.f32 1.0, %v1635_v19  ;;  %vm836_vm1 = vmor %vm834_vm0, %vm835_vm15 }
 0x9f6   :  { %v831_v20 = vsub.f32 1.0, %v830_v18 }
 0x9f7   :  { %1636 = vrcp.f32 %v758_v21  ;;  %v770_v33 = vand.u32 2147483648, %v758_v21  ;;  %vm764_vm4 = vweird.f32 %v758_v21  ;;  %v768_v50 = vand.u32 2147483647, %v758_v21 }
 0x9f8   :  { %v832_v22 = vmul.f32 %v1633_v17, %v831_v20 }
 0x9f9   :  { %v771_v53 = vor.u32 1.1754944e-38, %v770_v33  ;;  %vm769_vm7 = vcmp.eq.f32.partialorder %v768_v50, 8.507059e+37 }
 0x9fa   :  { %v833_v23 = vadd.f32 %v1633_v17, %v832_v22 }
 0x9fc   :  { %v837_v26 = vsel %vm836_vm1, %v1633_v17, %v833_v23 }
 0x9fd   :  { %v1637_v27 = vpop.eup %1636  ;;  %v842_v31 = vsel %vm839_vm2, %v841_v28, %v837_v26 }
 0x9fe   :  { %v760_v34 = vmul.f32 %v1637_v27, %v758_v21  ;;  %vm765_vm3 = vweird.f32 %v1637_v27  ;;  %v845_v58 = vmul.f32 %v842_v31, %v2086_v54 }
 0x9ff   :  { %vm766_vm6 = vmor %vm764_vm4, %vm765_vm3 }
 0xa00   :  { %v761_v44 = vsub.f32 1.0, %v760_v34 }
 0xa02   :  { %v762_v45 = vmul.f32 %v1637_v27, %v761_v44 }
 0xa04   :  { %v763_v48 = vadd.f32 %v1637_v27, %v762_v45 }
 0xa06   :  { %v767_v51 = vsel %vm766_vm6, %v1637_v27, %v763_v48 }
 0xa07   :  { %v772_v55 = vsel %vm769_vm7, %v771_v53, %v767_v51 }
 0xa08   :  { %v775_v52 = vmul.f32 %v772_v55, %v2090_v57 }
 0xa43   :  { %v848_v29 = vpop.permute.xlu2 %847 }
 0xa44   :  { %v850_v32 = vmul.f32 %v848_v29, %v842_v31 }
 0xa46   :  { %852 = vrot.lane.b32.xlu1 %v850_v32, %s1838_s4 }
 0xa57   :  { %v778_v43 = vpop.permute.xlu1 %777 }
 0xa58   :  { %v780_v30 = vmul.f32 %v778_v43, %v772_v55 }
 0xa5a   :  { %782 = vrot.lane.b32.xlu0 %v780_v30, %s1838_s4 }
 0xab8   :  { %v853_v59 = vpop.permute.xlu1 %852 }
 0xab9   :  { %v2121_v49 = vadd.f32 %v853_v59, %v845_v58 }
 0xabb   :  { %1638 = vtanh.f32 %v2121_v49 }
 0xac1   :  { %v1639_v60 = vpop.eup %1638 }
 0xac2   :  { %858 = vrot.lane.b32.xlu0 %v1639_v60, %s1837_s18 }
 0xacc   :  { %v783_v62 = vpop.permute.xlu0 %782 }
 0xacd   :  { %v2126_v63 = vadd.f32 %v783_v62, %v775_v52 }
 0xacf   :  { %1640 = vtanh.f32 %v2126_v63 }
 0xad5   :  { %v1641_v9 = vpop.eup %1640 }
 0xad6   :  { %788 = vrot.lane.b32.xlu2 %v1641_v9, %s1837_s18 }
 0xb30   :  { %v789_v0 = vpop.permute.xlu2 %788 }
 0xb31   :  { %v2130_v54 = vmul.f32 %v789_v0, %v772_v55  ;;  %v1119_v0 = vld [vmem:[#allocation2 + $0xc] sm:$0x3] }
 0xb33   :  { %863 = vrot.lane.b32.xlu1 %v2130_v54, %s1838_s4 }
 0xb34   :  { %v859_v1 = vpop.permute.xlu0 %858 }
 0xb35   :  { %v861_v2 = vmul.f32 %v859_v1, %v842_v31 }
 0xb37   :  { %888 = vrot.lane.b32.xlu2 %v861_v2, %s1838_s4 }
 0xb91   :  { %v889_v3 = vpop.permute.xlu2 %888 }
 0xb92   :  { %1509 = vmatmul.msk.f32.vlgmr.msrb.gmra.mxu0 %vm165_vm5, %v889_v3  ;;  %1512 = vmatmul.msk.f32.vlgmr.msra.gmra.mxu1 %vm165_vm5, %v889_v3 }
 0xb93   :  { %1378 = vmatpush.msra.mxu1 %v1950_v36  ;;  %1353 = vmatpush.msrb.mxu0 %v1948_v35  ;;  %v961_v35 = vld [vmem:[#allocation2 + $0xa] sm:$0x3] }
 0xb95   :  { %1379 = vmatpush.msra.mxu1 %v1956_v38  ;;  %1354 = vmatpush.msrb.mxu0 %v1952_v37 }
 0xb97   :  { %1380 = vmatpush.msra.mxu1 %v1960_v40  ;;  %1355 = vmatpush.msrb.mxu0 %v1958_v39 }
 0xb99   :  { %1381 = vmatpush.msra.mxu1 %v1968_v42  ;;  %1356 = vmatpush.msrb.mxu0 %v1966_v41 }
 0xba5   :  { %v864_v57 = vpop.permute.xlu1 %863 }
 0xba6   :  { %1508 = vmatmul.msk.f32.vlgmr.msrb.gmra.mxu3 %vm165_vm5, %v864_v57 }
 0xba7   :  { %1290 = vmatpush.msrb.mxu3 %v1914_v4 }
 0xba9   :  { %1291 = vmatpush.msrb.mxu3 %v1916_v5 }
 0xbab   :  { %1292 = vmatpush.msrb.mxu3 %v1919_v6 }
 0xbad   :  { %1293 = vmatpush.msrb.mxu3 %v1923_v7 }
 0xc0f   :  { %v979_v36 = vpop.f32.mrf.mxu1  ;;  %v909_v39 = vpop.f32.mrf.mxu0 }
 0xc10   :  { %v982_v37 = vadd.f32 %v979_v36, %v961_v35 }
 0xc12   :  { %1642 = vtanh.f32 %v982_v37  ;;  %v1513_v5 = vmul.f32 -1.442695, %v982_v37 }
 0xc18   :  { %v1643_v38 = vpop.eup %1642 }
 0xc19   :  { %1005 = vrot.lane.b32.xlu1 %v1643_v38, %s1837_s18 }
 0xc29   :  { %v884_v40 = vpop.f32.mrf.mxu3 }
 0xc2a   :  { %v910_v41 = vadd.f32 %v909_v39, %v884_v40 }
 0xc2c   :  { %v912_v42 = vadd.f32 %v2007_v47, %v910_v41 }
 0xc2e   :  { %1644 = vtanh.f32 %v912_v42  ;;  %v1510_v12 = vmul.f32 -1.442695, %v912_v42 }
 0xc2f   :  { %1646 = vpow2.f32 %v1513_v5 }
 0xc34   :  { %v1645_v4 = vpop.eup %1644 }
 0xc35   :  { %935 = vrot.lane.b32.xlu0 %v1645_v4, %s1837_s18  ;;  %v1647_v6 = vpop.eup %1646 }
 0xc36   :  { %v986_v7 = vadd.f32 1.0, %v1647_v6 }
 0xc38   :  { %1648 = vrcp.f32 %v986_v7  ;;  %v998_v17 = vand.u32 2147483648, %v986_v7  ;;  %vm992_vm9 = vweird.f32 %v986_v7  ;;  %v996_v18 = vand.u32 2147483647, %v986_v7 }
 0xc39   :  { %1650 = vpow2.f32 %v1510_v12 }
 0xc3a   :  { %v999_v21 = vor.u32 1.1754944e-38, %v998_v17  ;;  %vm997_vm11 = vcmp.eq.f32.partialorder %v996_v18, 8.507059e+37 }
 0xc3e   :  { %v1649_v10 = vpop.eup %1648 }
 0xc3f   :  { %v988_v11 = vmul.f32 %v1649_v10, %v986_v7  ;;  %v1651_v15 = vpop.eup %1650  ;;  %vm993_vm8 = vweird.f32 %v1649_v10 }
 0xc40   :  { %v916_v19 = vadd.f32 1.0, %v1651_v15  ;;  %vm994_vm10 = vmor %vm992_vm9, %vm993_vm8 }
 0xc41   :  { %v989_v13 = vsub.f32 1.0, %v988_v11 }
 0xc42   :  { %1652 = vrcp.f32 %v916_v19  ;;  %v928_v31 = vand.u32 2147483648, %v916_v19  ;;  %vm922_vm13 = vweird.f32 %v916_v19  ;;  %v926_v32 = vand.u32 2147483647, %v916_v19 }
 0xc43   :  { %v990_v14 = vmul.f32 %v1649_v10, %v989_v13 }
 0xc44   :  { %v929_v44 = vor.u32 1.1754944e-38, %v928_v31  ;;  %vm927_vm15 = vcmp.eq.f32.partialorder %v926_v32, 8.507059e+37 }
 0xc45   :  { %v991_v16 = vadd.f32 %v1649_v10, %v990_v14 }
 0xc47   :  { %v995_v20 = vsel %vm994_vm10, %v1649_v10, %v991_v16 }
 0xc48   :  { %v1000_v23 = vsel %vm997_vm11, %v999_v21, %v995_v20  ;;  %v1653_v25 = vpop.eup %1652 }
 0xc49   :  { %v918_v26 = vmul.f32 %v1653_v25, %v916_v19  ;;  %vm923_vm12 = vweird.f32 %v1653_v25  ;;  %v1003_v50 = vmul.f32 %v1000_v23, %v2121_v49 }
 0xc4a   :  { %vm924_vm14 = vmor %vm922_vm13, %vm923_vm12 }
 0xc4b   :  { %v919_v27 = vsub.f32 1.0, %v918_v26 }
 0xc4d   :  { %v920_v28 = vmul.f32 %v1653_v25, %v919_v27 }
 0xc4f   :  { %v921_v29 = vadd.f32 %v1653_v25, %v920_v28 }
 0xc51   :  { %v925_v34 = vsel %vm924_vm14, %v1653_v25, %v921_v29 }
 0xc52   :  { %v930_v48 = vsel %vm927_vm15, %v929_v44, %v925_v34 }
 0xc53   :  { %v933_v43 = vmul.f32 %v930_v48, %v2126_v63 }
 0xc8b   :  { %v1006_v22 = vpop.permute.xlu1 %1005 }
 0xc8c   :  { %v1008_v24 = vmul.f32 %v1006_v22, %v1000_v23 }
 0xc8e   :  { %1010 = vrot.lane.b32.xlu0 %v1008_v24, %s1838_s4 }
 0xca7   :  { %v936_v45 = vpop.permute.xlu0 %935 }
 0xca8   :  { %v938_v33 = vmul.f32 %v936_v45, %v930_v48 }
 0xcaa   :  { %940 = vrot.lane.b32.xlu2 %v938_v33, %s1838_s4 }
 0xd00   :  { %v1011_v51 = vpop.permute.xlu0 %1010 }
 0xd01   :  { %v2156_v53 = vadd.f32 %v1011_v51, %v1003_v50 }
 0xd03   :  { %1654 = vtanh.f32 %v2156_v53 }
 0xd04   :  { %v941_v55 = vpop.permute.xlu2 %940 }
 0xd05   :  { %v2160_v30 = vadd.f32 %v941_v55, %v933_v43 }
 0xd07   :  { %1656 = vtanh.f32 %v2160_v30 }
 0xd09   :  { %v1655_v58 = vpop.eup %1654 }
 0xd0a   :  { %1016 = vrot.lane.b32.xlu2 %v1655_v58, %s1837_s18 }
 0xd0d   :  { %v1657_v59 = vpop.eup %1656 }
 0xd0e   :  { %946 = vrot.lane.b32.xlu1 %v1657_v59, %s1837_s18 }
 0xd64   :  { %v1017_v60 = vpop.permute.xlu2 %1016 }
 0xd65   :  { %v1019_v49 = vmul.f32 %v1017_v60, %v1000_v23  ;;  %v1277_v60 = vld [vmem:[#allocation2 + $0xe] sm:$0x3] }
 0xd67   :  { %1046 = vrot.lane.b32.xlu1 %v1019_v49, %s1838_s4 }
 0xd80   :  { %v947_v52 = vpop.permute.xlu1 %946 }
 0xd81   :  { %v2166_v62 = vmul.f32 %v947_v52, %v930_v48 }
 0xd83   :  { %1021 = vrot.lane.b32.xlu0 %v2166_v62, %s1838_s4 }
 0xdd9   :  { %v1047_v63 = vpop.permute.xlu1 %1046 }
 0xdda   :  { %1515 = vmatmul.msk.f32.vlgmr.msra.gmra.mxu3 %vm165_vm5, %v1047_v63  ;;  %1518 = vmatmul.msk.f32.vlgmr.msra.gmra.mxu0 %vm165_vm5, %v1047_v63 }
 0xdf5   :  { %v1022_v9 = vpop.permute.xlu0 %1021 }
 0xdf6   :  { %1514 = vmatmul.msk.f32.vlgmr.msra.gmra.mxu2 %vm165_vm5, %v1022_v9 }
 0xe57   :  { %v1137_v1 = vpop.f32.mrf.mxu0 }
 0xe58   :  { %v1140_v2 = vadd.f32 %v1137_v1, %v1119_v0 }
 0xe5a   :  { %1658 = vtanh.f32 %v1140_v2  ;;  %v1519_v39 = vmul.f32 -1.442695, %v1140_v2 }
 0xe5d   :  { %v1067_v57 = vpop.f32.mrf.mxu3 }
 0xe60   :  { %v1659_v3 = vpop.eup %1658 }
 0xe61   :  { %1163 = vrot.lane.b32.xlu2 %v1659_v3, %s1837_s18  ;;  %v2200_v3 = vld [vmem:[%s2257_s7] ss:$0 sm:$0xff] }
 0xe79   :  { %v1042_v35 = vpop.f32.mrf.mxu2 }
 0xe7a   :  { %v1068_v36 = vadd.f32 %v1067_v57, %v1042_v35 }
 0xe7c   :  { %v1070_v37 = vadd.f32 %v2007_v47, %v1068_v36 }
 0xe7e   :  { %1660 = vtanh.f32 %v1070_v37  ;;  %v1516_v16 = vmul.f32 -1.442695, %v1070_v37 }
 0xe7f   :  { %1662 = vpow2.f32 %v1519_v39 }
 0xe84   :  { %v1661_v38 = vpop.eup %1660 }
 0xe85   :  { %1093 = vrot.lane.b32.xlu0 %v1661_v38, %s1837_s18  ;;  %v1663_v40 = vpop.eup %1662 }
 0xe86   :  { %v1144_v41 = vadd.f32 1.0, %v1663_v40 }
 0xe88   :  { %1664 = vrcp.f32 %v1144_v41  ;;  %v1156_v10 = vand.u32 2147483648, %v1144_v41  ;;  %vm1150_vm1 = vweird.f32 %v1144_v41  ;;  %v1154_v11 = vand.u32 2147483647, %v1144_v41 }
 0xe89   :  { %1666 = vpow2.f32 %v1516_v16 }
 0xe8a   :  { %v1157_v12 = vor.u32 1.1754944e-38, %v1156_v10  ;;  %vm1155_vm3 = vcmp.eq.f32.partialorder %v1154_v11, 8.507059e+37 }
 0xe8e   :  { %v1665_v42 = vpop.eup %1664 }
 0xe8f   :  { %v1146_v4 = vmul.f32 %v1665_v42, %v1144_v41  ;;  %vm1151_vm0 = vweird.f32 %v1665_v42  ;;  %v1667_v17 = vpop.eup %1666 }
 0xe90   :  { %vm1152_vm2 = vmor %vm1150_vm1, %vm1151_vm0  ;;  %v1074_v18 = vadd.f32 1.0, %v1667_v17 }
 0xe91   :  { %v1147_v5 = vsub.f32 1.0, %v1146_v4 }
 0xe92   :  { %1668 = vrcp.f32 %v1074_v18  ;;  %v1086_v24 = vand.u32 2147483648, %v1074_v18  ;;  %vm1080_vm6 = vweird.f32 %v1074_v18  ;;  %v1084_v25 = vand.u32 2147483647, %v1074_v18 }
 0xe93   :  { %v1148_v6 = vmul.f32 %v1665_v42, %v1147_v5 }
 0xe94   :  { %v1087_v27 = vor.u32 1.1754944e-38, %v1086_v24  ;;  %vm1085_vm8 = vcmp.eq.f32.partialorder %v1084_v25, 8.507059e+37 }
 0xe95   :  { %v1149_v7 = vadd.f32 %v1665_v42, %v1148_v6 }
 0xe97   :  { %v1153_v47 = vsel %vm1152_vm2, %v1665_v42, %v1149_v7 }
 0xe98   :  { %v1158_v14 = vsel %vm1155_vm3, %v1157_v12, %v1153_v47  ;;  %v1669_v19 = vpop.eup %1668 }
 0xe99   :  { %v1076_v20 = vmul.f32 %v1669_v19, %v1074_v18  ;;  %vm1081_vm4 = vweird.f32 %v1669_v19  ;;  %v1161_v32 = vmul.f32 %v1158_v14, %v2156_v53 }
 0xe9a   :  { %vm1082_vm7 = vmor %vm1080_vm6, %vm1081_vm4 }
 0xe9b   :  { %v1077_v21 = vsub.f32 1.0, %v1076_v20 }
 0xe9d   :  { %v1078_v22 = vmul.f32 %v1669_v19, %v1077_v21 }
 0xe9f   :  { %v1079_v23 = vadd.f32 %v1669_v19, %v1078_v22 }
 0xea1   :  { %v1083_v26 = vsel %vm1082_vm7, %v1669_v19, %v1079_v23 }
 0xea2   :  { %v1088_v29 = vsel %vm1085_vm8, %v1087_v27, %v1083_v26 }
 0xea3   :  { %v1091_v48 = vmul.f32 %v1088_v29, %v2160_v30 }
 0xebb   :  { %v1164_v13 = vpop.permute.xlu2 %1163 }
 0xebc   :  { %v1166_v15 = vmul.f32 %v1164_v13, %v1158_v14 }
 0xebe   :  { %1168 = vrot.lane.b32.xlu1 %v1166_v15, %s1838_s4 }
 0xef7   :  { %v1094_v28 = vpop.permute.xlu0 %1093 }
 0xef8   :  { %v1096_v31 = vmul.f32 %v1094_v28, %v1088_v29 }
 0xefa   :  { %1098 = vrot.lane.b32.xlu2 %v1096_v31, %s1838_s4 }
 0xf30   :  { %v1169_v34 = vpop.permute.xlu1 %1168 }
 0xf31   :  { %v2179_v44 = vadd.f32 %v1169_v34, %v1161_v32 }
 0xf33   :  { %1670 = vtanh.f32 %v2179_v44 }
 0xf39   :  { %v1671_v45 = vpop.eup %1670 }
 0xf3a   :  { %1174 = vrot.lane.b32.xlu0 %v1671_v45, %s1837_s18 }
 0xf54   :  { %v1099_v33 = vpop.permute.xlu2 %1098 }
 0xf55   :  { %v2184_v50 = vadd.f32 %v1099_v33, %v1091_v48  ;;  %v1839_v33 = vmov 0  }
 0xf56   :  { %1543 = vset.pattern.permute.xlu2 %v1839_v33  ;;  %1549 = vset.pattern.permute.xlu0 %v1839_v33 }
 0xf57   :  { %1672 = vtanh.f32 %v2184_v50  ;;  %1555 = vset.pattern.permute.xlu1 %v1839_v33 }
 0xf5d   :  { %v1673_v51 = vpop.eup %1672 }
 0xf5e   :  { %1104 = vrot.lane.b32.xlu1 %v1673_v51, %s1837_s18 }
 0xfac   :  { %v1175_v43 = vpop.permute.xlu0 %1174 }
 0xfad   :  { %v1177_v53 = vmul.f32 %v1175_v43, %v1158_v14 }
 0xfaf   :  { %1204 = vrot.lane.b32.xlu2 %v1177_v53, %s1838_s4 }
 0xfd0   :  { %v1105_v55 = vpop.permute.xlu1 %1104 }
 0xfd1   :  { %v2189_v58 = vmul.f32 %v1105_v55, %v1088_v29 }
 0xfd3   :  { %1179 = vrot.lane.b32.xlu0 %v2189_v58, %s1838_s4 }
0x1009   :  { %v1205_v59 = vpop.permute.xlu2 %1204 }
0x100a   :  { %1521 = vmatmul.msk.f32.vlgmr.msrb.gmra.mxu2 %vm165_vm5, %v1205_v59  ;;  %1524 = vmatmul.msk.f32.vlgmr.msrb.gmra.mxu3 %vm165_vm5, %v1205_v59 }
0x1045   :  { %v1180_v30 = vpop.permute.xlu0 %1179 }
0x1046   :  { %1520 = vmatmul.msk.f32.vlgmr.msrb.gmra.mxu1 %vm165_vm5, %v1180_v30 }
0x108d   :  { %v1295_v49 = vpop.f32.mrf.mxu3  ;;  %v1225_v9 = vpop.f32.mrf.mxu2 }
0x108e   :  { %v1298_v52 = vadd.f32 %v1295_v49, %v1277_v60 }
0x1090   :  { %1674 = vtanh.f32 %v1298_v52  ;;  %v1525_v0 = vmul.f32 -1.442695, %v1298_v52 }
0x1092   :  { %1676 = vpow2.f32 %v1525_v0 }
0x1096   :  { %v1675_v63 = vpop.eup %1674 }
0x1097   :  { %1321 = vrot.lane.b32.xlu2 %v1675_v63, %s1837_s18 }
0x1098   :  { %v1677_v35 = vpop.eup %1676 }
0x1099   :  { %v1302_v37 = vadd.f32 1.0, %v1677_v35 }
0x109b   :  { %v1314_v4 = vand.u32 2147483648, %v1302_v37  ;;  %vm1308_vm10 = vweird.f32 %v1302_v37  ;;  %v1312_v5 = vand.u32 2147483647, %v1302_v37 }
0x109d   :  { %v1315_v7 = vor.u32 1.1754944e-38, %v1314_v4  ;;  %vm1313_vm12 = vcmp.eq.f32.partialorder %v1312_v5, 8.507059e+37 }
0x10c3   :  { %v1200_v1 = vpop.f32.mrf.mxu1 }
0x10c4   :  { %v1226_v2 = vadd.f32 %v1225_v9, %v1200_v1 }
0x10c6   :  { %v1228_v57 = vadd.f32 %v2200_v3, %v1226_v2 }
0x10c8   :  { %1678 = vtanh.f32 %v1228_v57  ;;  %v1522_v12 = vmul.f32 -1.442695, %v1228_v57 }
0x10c9   :  { %1680 = vrcp.f32 %v1302_v37 }
0x10ca   :  { %1682 = vpow2.f32 %v1522_v12 }
0x10ce   :  { %v1679_v36 = vpop.eup %1678 }
0x10cf   :  { %1251 = vrot.lane.b32.xlu1 %v1679_v36, %s1837_s18  ;;  %v1681_v38 = vpop.eup %1680 }
0x10d0   :  { %v1304_v39 = vmul.f32 %v1681_v38, %v1302_v37  ;;  %vm1309_vm9 = vweird.f32 %v1681_v38  ;;  %v1683_v13 = vpop.eup %1682 }
0x10d1   :  { %vm1310_vm11 = vmor %vm1308_vm10, %vm1309_vm9  ;;  %v1232_v14 = vadd.f32 1.0, %v1683_v13 }
0x10d2   :  { %v1305_v40 = vsub.f32 1.0, %v1304_v39 }
0x10d3   :  { %1684 = vrcp.f32 %v1232_v14  ;;  %v1244_v20 = vand.u32 2147483648, %v1232_v14  ;;  %vm1238_vm14 = vweird.f32 %v1232_v14  ;;  %v1242_v21 = vand.u32 2147483647, %v1232_v14 }
0x10d4   :  { %v1306_v41 = vmul.f32 %v1681_v38, %v1305_v40 }
0x10d5   :  { %v1245_v23 = vor.u32 1.1754944e-38, %v1244_v20  ;;  %vm1243_vm0 = vcmp.eq.f32.partialorder %v1242_v21, 8.507059e+37 }
0x10d6   :  { %v1307_v42 = vadd.f32 %v1681_v38, %v1306_v41 }
0x10d8   :  { %v1311_v6 = vsel %vm1310_vm11, %v1681_v38, %v1307_v42 }
0x10d9   :  { %v1316_v11 = vsel %vm1313_vm12, %v1315_v7, %v1311_v6  ;;  %v1685_v15 = vpop.eup %1684 }
0x10da   :  { %v1234_v16 = vmul.f32 %v1685_v15, %v1232_v14  ;;  %vm1239_vm13 = vweird.f32 %v1685_v15  ;;  %v1319_v27 = vmul.f32 %v1316_v11, %v2179_v44  ;;  %v155_v44 = vld [vmem:[%s2251_s1] sm:$0x3] }
0x10db   :  { %vm1240_vm15 = vmor %vm1238_vm14, %vm1239_vm13  ;;  %vm318_vm1 = vcmp.eq.s32.totalorder %v155_v44, 1  ;;  %vm476_vm2 = vcmp.eq.s32.totalorder %v155_v44, 2  ;;  %vm1266_vm3 = vcmp.eq.s32.totalorder %v155_v44, 7  ;;  %vm1424_vm4 = vcmp.eq.s32.totalorder %v155_v44, 8 }
0x10dc   :  { %v1235_v17 = vsub.f32 1.0, %v1234_v16  ;;  %v1493_v53 = vsel %vm476_vm2, 1.0, %v1836_v8  ;;  %v1523_v59 = vsel %vm1266_vm3, 1.0, %v1836_v8  ;;  %v1529_v30 = vsel %vm1424_vm4, 1.0, %v1836_v8 }
0x10dd   :  { %v1561_v60 = vpack.i.bf16 %v1529_v30, %v1523_v59  ;;  %vm634_vm6 = vcmp.eq.s32.totalorder %v155_v44, 3  ;;  %vm792_vm7 = vcmp.eq.s32.totalorder %v155_v44, 4  ;;  %vm950_vm11 = vcmp.eq.s32.totalorder %v155_v44, 5 }
0x10de   :  { %v1236_v18 = vmul.f32 %v1685_v15, %v1235_v17  ;;  %v1499_v36 = vsel %vm634_vm6, 1.0, %v1836_v8  ;;  %v1505_v37 = vsel %vm792_vm7, 1.0, %v1836_v8  ;;  %vm1108_vm12 = vcmp.eq.s32.totalorder %v155_v44, 6 }
0x10df   :  { %v1550_v38 = vpack.i.bf16 %v1505_v37, %v1499_v36  ;;  %v1517_v16 = vsel %vm1108_vm12, 1.0, %v1836_v8  ;;  %vm1445_vm13 = vcmask 254976  }
0x10e0   :  { %v1237_v19 = vadd.f32 %v1685_v15, %v1236_v18  ;;  %v1568_v18 = vld [vmem:[%s2258_s8] ss:$0 sm:$0xff] }
0x10e2   :  { %v1241_v22 = vsel %vm1240_vm15, %v1685_v15, %v1237_v19  ;;  %v1511_v15 = vsel %vm950_vm11, 1.0, %v1836_v8 }
0x10e3   :  { %v1246_v25 = vsel %vm1243_vm0, %v1245_v23, %v1241_v22  ;;  %v1556_v17 = vpack.i.bf16 %v1517_v16, %v1511_v15  ;;  %vm1473_vm0 = vcmask 1024  }
0x10e4   :  { %v1249_v32 = vmul.f32 %v1246_v25, %v2184_v50  ;;  %v1487_v50 = vsel %vm318_vm1, 1.0, %v1836_v8 }
0x10e5   :  { %v1544_v55 = vpack.i.bf16 %v1493_v53, %v1487_v50 }
0x10f1   :  { %v1322_v10 = vpop.permute.xlu2 %1321 }
0x10f2   :  { %v1324_v47 = vmul.f32 %v1322_v10, %v1316_v11 }
0x10f4   :  { %1326 = vrot.lane.b32.xlu1 %v1324_v47, %s1838_s4 }
0x1141   :  { %v1252_v24 = vpop.permute.xlu1 %1251 }
0x1142   :  { %v1254_v26 = vmul.f32 %v1252_v24, %v1246_v25 }
0x1144   :  { %1256 = vrot.lane.b32.xlu0 %v1254_v26, %s1838_s4 }
0x1166   :  { %v1327_v28 = vpop.permute.xlu1 %1326 }
0x1167   :  { %v1329_v29 = vadd.f32 %v1327_v28, %v1319_v27 }
0x1169   :  { %1686 = vtanh.f32 %v1329_v29 }
0x116f   :  { %v1687_v31 = vpop.eup %1686 }
0x1170   :  { %1332 = vrot.lane.b32.xlu0 %v1687_v31, %s1837_s18 }
0x11b6   :  { %v1257_v34 = vpop.permute.xlu0 %1256 }
0x11b7   :  { %v2209_v45 = vadd.f32 %v1257_v34, %v1249_v32 }
0x11b9   :  { %1688 = vtanh.f32 %v2209_v45 }
0x11bf   :  { %v1689_v48 = vpop.eup %1688 }
0x11c0   :  { %1262 = vrot.lane.b32.xlu2 %v1689_v48, %s1837_s18 }
0x11e2   :  { %v1333_v51 = vpop.permute.xlu0 %1332 }
0x11e3   :  { %v1335_v43 = vmul.f32 %v1333_v51, %v1316_v11 }
0x11e5   :  { %1362 = vrot.lane.b32.xlu2 %v1335_v43, %s1838_s4 }
0x11ed   :  { %1545 = vperm.xlu2 %1543, %v1544_v55  }
0x11f5   :  { %1562 = vperm.xlu2 %1543, %v1561_v60  }
0x11fd   :  { %1437 = vrot.lane.b32.xlu2 %v1568_v18, %s1840_s9 }
0x121a   :  { %v1263_v49 = vpop.permute.xlu2 %1262 }
0x121b   :  { %v2221_v52 = vmul.f32 %v1263_v49, %v1246_v25 }
0x121d   :  { %1337 = vrot.lane.b32.xlu1 %v2221_v52, %s1838_s4 }
0x123f   :  { %v1363_v63 = vpop.permute.xlu2 %1362 }
0x1240   :  { %1527 = vmatmul.msk.f32.vlgmr.msra.gmra.mxu1 %vm165_vm5, %v1363_v63 }
0x1247   :  { %v1546_v23 = vpop.permute.xlu2 %1545 }
0x1248   :  { %v1548_v25 = vunpack.i.h.bf16 %v1546_v23  ;;  %v1547_v8 = vunpack.i.l.bf16 %v1546_v23 }
0x124a   :  { %v484_v27 = vmul.f32 %v1548_v25, %v2061_v56  ;;  %v326_v28 = vmul.f32 %v1547_v8, %v2023_v46 }
0x124c   :  { %v485_v32 = vadd.f32 %v484_v27, %v326_v28 }
0x124f   :  { %v1563_v50 = vpop.permute.xlu2 %1562 }
0x1250   :  { %v1564_v55 = vunpack.i.l.bf16 %v1563_v50  ;;  %v1565_v30 = vunpack.i.h.bf16 %v1563_v50 }
0x128f   :  { %v1338_v9 = vpop.permute.xlu1 %1337 }
0x1290   :  { %1526 = vmatmul.msk.f32.vlgmr.msrb.gmra.mxu0 %vm165_vm5, %v1338_v9  ;;  %v1438_v9 = vpop.permute.xlu2 %1437 }
0x12bd   :  { %v1383_v0 = vpop.f32.mrf.mxu1 }
0x130d   :  { %v1358_v1 = vpop.f32.mrf.mxu0 }
0x130e   :  { %v1384_v2 = vadd.f32 %v1383_v0, %v1358_v1 }
0x1310   :  { %v1386_v57 = vadd.f32 %v2200_v3, %v1384_v2  ;;  %v1569_v2 = vld [vmem:[#allocation3] ss:$0 sm:$0xff] }
0x1312   :  { %1690 = vtanh.f32 %v1386_v57  ;;  %v1528_v39 = vmul.f32 -1.442695, %v1386_v57 }
0x1314   :  { %1692 = vpow2.f32 %v1528_v39 }
0x1318   :  { %v1691_v35 = vpop.eup %1690 }
0x1319   :  { %1409 = vrot.lane.b32.xlu0 %v1691_v35, %s1837_s18 }
0x131a   :  { %v1693_v40 = vpop.eup %1692 }
0x131b   :  { %v1390_v41 = vadd.f32 1.0, %v1693_v40 }
0x131d   :  { %1694 = vrcp.f32 %v1390_v41  ;;  %v1402_v7 = vand.u32 2147483648, %v1390_v41  ;;  %vm1396_vm8 = vweird.f32 %v1390_v41  ;;  %v1400_v10 = vand.u32 2147483647, %v1390_v41 }
0x131f   :  { %v1403_v47 = vor.u32 1.1754944e-38, %v1402_v7  ;;  %vm1401_vm10 = vcmp.eq.f32.partialorder %v1400_v10, 8.507059e+37 }
0x1321   :  { %1551 = vperm.xlu0 %1549, %v1550_v38  }
0x1323   :  { %v1695_v42 = vpop.eup %1694 }
0x1324   :  { %v1392_v4 = vmul.f32 %v1695_v42, %v1390_v41  ;;  %vm1397_vm5 = vweird.f32 %v1695_v42 }
0x1325   :  { %vm1398_vm9 = vmor %vm1396_vm8, %vm1397_vm5 }
0x1326   :  { %v1393_v3 = vsub.f32 1.0, %v1392_v4 }
0x1328   :  { %v1394_v5 = vmul.f32 %v1695_v42, %v1393_v3 }
0x132a   :  { %v1395_v6 = vadd.f32 %v1695_v42, %v1394_v5 }
0x132c   :  { %v1399_v11 = vsel %vm1398_vm9, %v1695_v42, %v1395_v6 }
0x132d   :  { %v1404_v13 = vsel %vm1401_vm10, %v1403_v47, %v1399_v11 }
0x132e   :  { %v1407_v19 = vmul.f32 %v1404_v13, %v2209_v45 }
0x138b   :  { %v1410_v12 = vpop.permute.xlu0 %1409 }
0x138c   :  { %v1412_v14 = vmul.f32 %v1410_v12, %v1404_v13 }
0x138e   :  { %1414 = vrot.lane.b32.xlu1 %v1412_v14, %s1838_s4 }
0x1393   :  { %v1552_v24 = vpop.permute.xlu0 %1551 }
0x1394   :  { %v1553_v26 = vunpack.i.l.bf16 %v1552_v24  ;;  %v1554_v34 = vunpack.i.h.bf16 %v1552_v24 }
0x1396   :  { %1557 = vperm.xlu1 %1555, %v1556_v17   ;;  %v642_v31 = vmul.f32 %v1553_v26, %v2096_v61  ;;  %v800_v33 = vmul.f32 %v1554_v34, %v2130_v54  ;;  %v1274_v61 = vmul.f32 %v1564_v55, %v2221_v52 }
0x1398   :  { %v643_v48 = vadd.f32 %v642_v31, %v485_v32 }
0x139a   :  { %v801_v51 = vadd.f32 %v800_v33, %v643_v48 }
0x1400   :  { %v1415_v20 = vpop.permute.xlu1 %1414 }
0x1401   :  { %v1417_v21 = vadd.f32 %v1415_v20, %v1407_v19 }
0x1403   :  { %1696 = vtanh.f32 %v1417_v21 }
0x1408   :  { %v1558_v29 = vpop.permute.xlu1 %1557 }
0x1409   :  { %v1697_v22 = vpop.eup %1696  ;;  %v1559_v45 = vunpack.i.l.bf16 %v1558_v29  ;;  %v1560_v43 = vunpack.i.h.bf16 %v1558_v29 }
0x140a   :  { %1420 = vrot.lane.b32.xlu1 %v1697_v22, %s1837_s18 }
0x140b   :  { %v958_v44 = vmul.f32 %v1559_v45, %v2166_v62  ;;  %v1116_v56 = vmul.f32 %v1560_v43, %v2189_v58 }
0x140d   :  { %v959_v53 = vadd.f32 %v958_v44, %v801_v51 }
0x140f   :  { %v1117_v59 = vadd.f32 %v1116_v56, %v959_v53 }
0x1411   :  { %v1275_v63 = vadd.f32 %v1274_v61, %v1117_v59 }
0x147c   :  { %v1421_v46 = vpop.permute.xlu1 %1420 }
0x147d   :  { %v1423_v60 = vmul.f32 %v1421_v46, %v1404_v13 }
0x147f   :  { %v1432_v49 = vmul.f32 %v1565_v30, %v1423_v60 }
0x1481   :  { %v1433_v0 = vadd.f32 %v1432_v49, %v1275_v63 }
0x1483   :  { %v1440_v54 = vmul.f32 %v1438_v9, %v1433_v0 }
0x1485   :  { %1442 = vrot.lane.b32.xlu0 %v1440_v54, %s1838_s4 }
0x14f7   :  { %v1443_v62 = vpop.permute.xlu0 %1442 }
0x14f8   :  { %v1446_v1 = vsel %vm1445_vm13, %v1443_v62, 0.0 }
0x14f9   :  { %1447 = vadd.xlane.f32.xlu1 %v1446_v1 }
0x156c   :  { %v1448_v57 = vpop.xlane.xlu1 %1447 }
0x156d   :  { %v1453_v58 = vadd.f32 %v1569_v2, %v1448_v57 }
0x156f   :  { %v1530_v35 = vmul.f32 -1.442695, %v1453_v58 }
0x1571   :  { %1698 = vpow2.f32 %v1530_v35 }
0x1577   :  { %v1699_v36 = vpop.eup %1698 }
0x1578   :  { %v1457_v37 = vadd.f32 1.0, %v1699_v36 }
0x157a   :  { %1700 = vrcp.f32 %v1457_v37  ;;  %v1469_v40 = vand.u32 2147483648, %v1457_v37  ;;  %v1467_v42 = vand.u32 2147483647, %v1457_v37  ;;  %vm1463_vm15 = vweird.f32 %v1457_v37 }
0x157c   :  { %v1470_v3 = vor.u32 1.1754944e-38, %v1469_v40  ;;  %vm1468_vm2 = vcmp.eq.f32.partialorder %v1467_v42, 8.507059e+37 }
0x1580   :  { %v1701_v52 = vpop.eup %1700 }
0x1581   :  { %v1459_v38 = vmul.f32 %v1701_v52, %v1457_v37  ;;  %vm1464_vm14 = vweird.f32 %v1701_v52 }
0x1582   :  { %vm1465_vm1 = vmor %vm1463_vm15, %vm1464_vm14 }
0x1583   :  { %v1460_v39 = vsub.f32 1.0, %v1459_v38 }
0x1585   :  { %v1461_v41 = vmul.f32 %v1701_v52, %v1460_v39 }
0x1587   :  { %v1462_v4 = vadd.f32 %v1701_v52, %v1461_v41 }
0x1589   :  { %v1466_v5 = vsel %vm1465_vm1, %v1701_v52, %v1462_v4 }
0x158a   :  { %v1471_v6 = vsel %vm1468_vm2, %v1470_v3, %v1466_v5 }
0x158b   :  { %1474 = vst.msk [vmem:[%s2260_s10] sm:$0x3] %vm1473_vm0, %v1471_v6 }
0x158c   :  { %1479 = vsyncpa [#allocation5], 1 }
0x158d   :  { %1480 = vsyncpa [#allocation7], 1 }
0x158e   :  { %1481 = vsyncpa [#allocation10], 1 }

</bundles_post_ra>
